<compile_context>
chip_gen: v5e
topology: v5e:2x2
jax: 0.10.0
libtpu: 0.0.40
codegen_flags: <defaults>
</compile_context>

<pallas_src>
import functools

import jax
import jax.numpy as jnp
from jax.experimental import pallas as pl
from jax.experimental.pallas import tpu as pltpu

EPS = 1e-5
LANE = 128
VMEM_LIMIT = 32 * 1024 * 1024  # safe on v5e / v6e / v7x


# --------------------------------------------------------------------------- #
# small static helpers
# --------------------------------------------------------------------------- #
def _round_up(x, m):
    return (x + m - 1) // m * m


def _pick_tile(c, pref):
    """Largest multiple of 128 <= pref that divides c (c is a multiple of 128)."""
    t = min(pref, c)
    while c % t != 0:
        t -= LANE
    return t


def _pick_bt(batch, hw, cap_rows):
    """Batch-tile size: divides batch, keeps bt*HW rows per tile <= cap_rows."""
    bt = 1
    while bt * 2 <= batch and batch % (bt * 2) == 0 and bt * 2 * hw <= cap_rows:
        bt *= 2
    if (bt * hw) % 8 != 0:          # fall back to a block spanning all rows
        bt = batch
    return bt


def _pad2(w, rows, cols):
    return jnp.pad(w, ((0, rows - w.shape[0]), (0, cols - w.shape[1])))


def _pad_vec(v, cols, value=0.0):
    return jnp.pad(v, ((0, 0), (0, cols - v.shape[1])), constant_values=value)


# --------------------------------------------------------------------------- #
# Kernel 1/3: tiled 1x1-conv (matmul) + optional fused input BN+ReLU + BN partials
# --------------------------------------------------------------------------- #
def _mm_bn_stats_kernel(*refs, apply_act):
    if apply_act:
        x_ref, sc_ref, sh_ref, w_ref, y_ref, st_ref, acc_ref = refs
    else:
        x_ref, w_ref, y_ref, st_ref, acc_ref = refs

    k = pl.program_id(2)

    @pl.when(k == 0)
    def _():
        acc_ref[...] = jnp.zeros_like(acc_ref)

    if apply_act:
        # previous layer's BatchNorm + ReLU folded onto the input tile
        x = jnp.maximum(x_ref[...].astype(jnp.float32) * sc_ref[...] + sh_ref[...], 0.0)
        xb = x.astype(jnp.bfloat16)
    else:
        xb = x_ref[...].astype(jnp.bfloat16)

    acc_ref[...] += jnp.dot(xb, w_ref[...].astype(jnp.bfloat16),
                            preferred_element_type=jnp.float32)

    @pl.when(k == pl.num_programs(2) - 1)
    def _():
        y = acc_ref[...]
        y_ref[...] = y.astype(y_ref.dtype)
        # partial BatchNorm statistics (from the f32 accumulator, never from bf16)
        st_ref[:, 0:1, :] = jnp.sum(y, axis=0, keepdims=True)[None]
        st_ref[:, 1:2, :] = jnp.sum(y * y, axis=0, keepdims=True)[None]


def _conv1x1_stats(x, w, scale_in=None, shift_in=None, *, rows_per_tile):
    """y = [relu(x*scale_in+shift_in)] @ w ; also returns per-tile (sum, sumsq)."""
    R, K = x.shape
    C = w.shape[1]
    tm = rows_per_tile
    tn = _pick_tile(C, 256)
    tk = _pick_tile(K, 512)
    gi, gj, gk = R // tm, C // tn, K // tk
    apply_act = scale_in is not None

    in_specs = [pl.BlockSpec((tm, tk), lambda i, j, k: (i, k))]
    inputs = [x]
    if apply_act:
        in_specs += [pl.BlockSpec((1, tk), lambda i, j, k: (0, k)),
                     pl.BlockSpec((1, tk), lambda i, j, k: (0, k))]
        inputs += [scale_in, shift_in]
    in_specs.append(pl.BlockSpec((tk, tn), lambda i, j, k: (k, j)))
    inputs.append(w)

    kernel = functools.partial(_mm_bn_stats_kernel, apply_act=apply_act)
    y, stats = pl.pallas_call(
        kernel,
        grid_spec=pltpu.PrefetchScalarGridSpec(
            num_scalar_prefetch=0,
            grid=(gi, gj, gk),
            in_specs=in_specs,
            out_specs=(pl.BlockSpec((tm, tn), lambda i, j, k: (i, j)),
                       pl.BlockSpec((1, 2, tn), lambda i, j, k: (i, 0, j))),
            scratch_shapes=[pltpu.VMEM((tm, tn), jnp.float32)]),
        out_shape=(jax.ShapeDtypeStruct((R, C), jnp.bfloat16),
                   jax.ShapeDtypeStruct((gi, 2, C), jnp.float32)),
        compiler_params=pltpu.CompilerParams(
            dimension_semantics=("parallel", "parallel", "arbitrary"),
            vmem_limit_bytes=VMEM_LIMIT),
        cost_estimate=pl.CostEstimate(
            flops=2 * R * K * C, transcendentals=0,
            bytes_accessed=x.size * x.dtype.itemsize + w.size * w.dtype.itemsize
                           + R * C * 2),
    )(*inputs)
    return y, stats


# --------------------------------------------------------------------------- #
# Kernel 2: 3x3 conv with in-kernel halo (no im2col) + fused input BN+ReLU
# --------------------------------------------------------------------------- #
def _conv3x3_stats_kernel(x_ref, m_ref, sc_ref, sh_ref, w_ref, y_ref, st_ref,
                          acc_ref, *, bt, H, W):
    k = pl.program_id(2)

    @pl.when(k == 0)
    def _():
        acc_ref[...] = jnp.zeros_like(acc_ref)

    sc = sc_ref[...].reshape(1, 1, 1, -1)
    sh = sh_ref[...].reshape(1, 1, 1, -1)
    x = x_ref[...].astype(jnp.float32)                      # (bt, H+2, W+2, tk)
    x = jnp.maximum(x * sc + sh, 0.0)                       # BN1 + ReLU (fused)
    x = (x * m_ref[...]).astype(jnp.bfloat16)               # re-zero the halo ring

    for dy in range(3):
        for dx in range(3):
            patch = x[:, dy:dy + H, dx:dx + W, :].reshape(bt * H * W, -1)
            acc_ref[...] += jnp.dot(patch, w_ref[dy, dx],
                                    preferred_element_type=jnp.float32)

    @pl.when(k == pl.num_programs(2) - 1)
    def _():
        y = acc_ref[...]
        y_ref[...] = y.astype(y_ref.dtype)
        st_ref[:, 0:1, :] = jnp.sum(y, axis=0, keepdims=True)[None]
        st_ref[:, 1:2, :] = jnp.sum(y * y, axis=0, keepdims=True)[None]


def _conv3x3_stats(y1p, scale1, shift1, w2, *, bt, H, W):
    B, Hp2, Wp2, Cin = y1p.shape
    Cout = w2.shape[-1]
    HW = H * W
    R = B * HW
    tn = _pick_tile(Cout, 256)
    tk = _pick_tile(Cin, 256)
    gb, gj, gk = B // bt, Cout // tn, Cin // tk

    # interior mask (1 inside, 0 on the zero-padding ring), sized to one input
    # block; its block index never changes so it is DMA'd exactly once.
    m2d = jnp.pad(jnp.ones((H, W), jnp.float32), ((1, 1), (1, 1)))
    mask = jnp.broadcast_to(m2d[None, :, :, None], (bt, Hp2, Wp2, tk))

    kernel = functools.partial(_conv3x3_stats_kernel, bt=bt, H=H, W=W)
    y2, stats = pl.pallas_call(
        kernel,
        grid_spec=pltpu.PrefetchScalarGridSpec(
            num_scalar_prefetch=0,
            grid=(gb, gj, gk),
            in_specs=[
                pl.BlockSpec((bt, Hp2, Wp2, tk), lambda b, j, k: (b, 0, 0, k)),
                pl.BlockSpec((bt, Hp2, Wp2, tk), lambda b, j, k: (0, 0, 0, 0)),
                pl.BlockSpec((1, tk), lambda b, j, k: (0, k)),
                pl.BlockSpec((1, tk), lambda b, j, k: (0, k)),
                pl.BlockSpec((3, 3, tk, tn), lambda b, j, k: (0, 0, k, j)),
            ],
            out_specs=(pl.BlockSpec((bt * HW, tn), lambda b, j, k: (b, j)),
                       pl.BlockSpec((1, 2, tn), lambda b, j, k: (b, 0, j))),
            scratch_shapes=[pltpu.VMEM((bt * HW, tn), jnp.float32)]),
        out_shape=(jax.ShapeDtypeStruct((R, Cout), jnp.bfloat16),
                   jax.ShapeDtypeStruct((gb, 2, Cout), jnp.float32)),
        compiler_params=pltpu.CompilerParams(
            dimension_semantics=("parallel", "parallel", "arbitrary"),
            vmem_limit_bytes=VMEM_LIMIT),
        cost_estimate=pl.CostEstimate(
            flops=2 * R * 9 * Cin * Cout, transcendentals=0,
            bytes_accessed=y1p.size * y1p.dtype.itemsize
                           + w2.size * w2.dtype.itemsize + R * Cout * 2),
    )(y1p, mask, scale1, shift1, w2)
    return y2, stats


# --------------------------------------------------------------------------- #
# Kernel 4: BN3+ReLU epilogue + global-avg-pool + reused teacher classifier
# --------------------------------------------------------------------------- #
def _finalize_kernel(y_ref, sc_ref, sh_ref, cw_ref, cb_ref, o_ref, pred_ref,
                     pooled_ref, *, bt, HW):
    i = pl.program_id(0)
    h = jnp.maximum(y_ref[...].astype(jnp.float32) * sc_ref[...] + sh_ref[...], 0.0)
    o_ref[...] = h                                               # trans_feat_s tile
    pooled_ref[i] = jnp.sum(h.reshape(bt, HW, -1), axis=1) * (1.0 / HW)

    @pl.when(i == pl.num_programs(0) - 1)
    def _():
        pooled = pooled_ref[...].reshape(-1, pooled_ref.shape[-1])   # (B, C)
        pred_ref[...] = (jnp.dot(pooled, cw_ref[...],
                                 preferred_element_type=jnp.float32) + cb_ref[...])


def _finalize_pool_cls(y3, scale3, shift3, cls_w, cls_b, *, bt, HW):
    R, C = y3.shape
    B = R // HW
    NC = cls_w.shape[1]
    gi = B // bt
    tm = bt * HW
    kernel = functools.partial(_finalize_kernel, bt=bt, HW=HW)
    h3, pred = pl.pallas_call(
        kernel,
        grid_spec=pltpu.PrefetchScalarGridSpec(
            num_scalar_prefetch=0,
            grid=(gi,),
            in_specs=[
                pl.BlockSpec((tm, C), lambda i: (i, 0)),
                pl.BlockSpec((1, C), lambda i: (0, 0)),
                pl.BlockSpec((1, C), lambda i: (0, 0)),
                pl.BlockSpec((C, NC), lambda i: (0, 0)),
                pl.BlockSpec((1, NC), lambda i: (0, 0)),
            ],
            out_specs=(pl.BlockSpec((tm, C), lambda i: (i, 0)),
                       pl.BlockSpec((B, NC), lambda i: (0, 0))),
            scratch_shapes=[pltpu.VMEM((gi, bt, C), jnp.float32)]),
        out_shape=(jax.ShapeDtypeStruct((R, C), jnp.float32),
                   jax.ShapeDtypeStruct((B, NC), jnp.float32)),
        compiler_params=pltpu.CompilerParams(
            dimension_semantics=("arbitrary",),
            vmem_limit_bytes=VMEM_LIMIT),
    )(y3, scale3, shift3, cls_w, cls_b)
    return h3, pred


# --------------------------------------------------------------------------- #
# plain-JAX glue (layout / tiny per-channel math only)
# --------------------------------------------------------------------------- #
def _fold_bn(stats, n_rows, gamma, beta):
    """Reduce per-tile (sum, sumsq) partials into BN scale/shift (training mode)."""
    s = jnp.sum(stats[:, 0, :], axis=0, keepdims=True)
    ss = jnp.sum(stats[:, 1, :], axis=0, keepdims=True)
    mean = s / n_rows
    var = jnp.maximum(ss / n_rows - mean * mean, 0.0)      # biased variance
    scale = gamma * jax.lax.rsqrt(var + EPS)
    shift = beta - mean * scale
    return scale, shift


def adaptive_avg_pool2d_nhwc(x, out_h, out_w):
    """Exact semantics of F.adaptive_avg_pool2d (PyTorch start/end formula)."""
    B, H, W, C = x.shape
    if H % out_h == 0 and W % out_w == 0:
        # fast path: evenly divisible -> plain reshape + mean (common case)
        kh, kw = H // out_h, W // out_w
        return jnp.mean(x.reshape(B, out_h, kh, out_w, kw, C), axis=(2, 4))
    rows = []
    for i in range(out_h):
        h0 = (i * H) // out_h
        h1 = -(-((i + 1) * H) // out_h)
        cols = []
        for j in range(out_w):
            w0 = (j * W) // out_w
            w1 = -(-((j + 1) * W) // out_w)
            cols.append(jnp.mean(x[:, h0:h1, w0:w1, :], axis=(1, 2)))
        rows.append(jnp.stack(cols, axis=1))
    return jnp.stack(rows, axis=1)


# --------------------------------------------------------------------------- #
# SimKD forward
# --------------------------------------------------------------------------- #
def simkd_forward(params, feat_s_nchw, feat_t_nchw, *, cap_rows=256):
    # TODO(synk): NCHW<->NHWC boundary transposes kept only for PyTorch layout
    # parity; a production integration should stay NHWC end-to-end.
    feat_s = jnp.transpose(feat_s_nchw, (0, 2, 3, 1))
    feat_t = jnp.transpose(feat_t_nchw, (0, 2, 3, 1))
    s_H, t_H = feat_s.shape[1], feat_t.shape[1]
    if s_H > t_H:
        source = adaptive_avg_pool2d_nhwc(feat_s, t_H, t_H)
        target = feat_t
    else:
        source = feat_s
        target = adaptive_avg_pool2d_nhwc(feat_t, s_H, s_H)

    B, H, W, s_n = source.shape
    HW = H * W
    R = B * HW
    mid = params["w1"].shape[1]
    t_n = params["w3"].shape[1]
    n_cls = params["cls_w"].shape[1]

    s_np = _round_up(s_n, LANE)
    midp = _round_up(mid, LANE)
    t_np = _round_up(t_n, LANE)
    ncp = _round_up(n_cls, LANE)

    bt = _pick_bt(B, HW, cap_rows)
    tm = bt * HW

    # parameter prep: lane-pad channel dims, bf16 conv weights (f32 classifier)
    w1 = _pad2(params["w1"], s_np, midp).astype(jnp.bfloat16)
    w2 = jnp.pad(params["w2"],
                 ((0, 0), (0, 0), (0, midp - mid), (0, midp - mid))).astype(jnp.bfloat16)
    w3 = _pad2(params["w3"], midp, t_np).astype(jnp.bfloat16)
    clw = _pad2(params["cls_w"], t_np, ncp)
    clb = _pad_vec(params["cls_b"], ncp)
    g1, b1 = _pad_vec(params["g1"], midp, 1.0), _pad_vec(params["b1"], midp)
    g2, b2 = _pad_vec(params["g2"], midp, 1.0), _pad_vec(params["b2"], midp)
    g3, b3 = _pad_vec(params["g3"], t_np, 1.0), _pad_vec(params["b3"], t_np)

    x0 = jnp.pad(source.reshape(R, s_n), ((0, 0), (0, s_np - s_n))).astype(jnp.bfloat16)

    # transfer: conv1x1 -> BN -> ReLU -> conv3x3 -> BN -> ReLU -> conv1x1 -> BN -> ReLU
    y1, st1 = _conv1x1_stats(x0, w1, rows_per_tile=tm)
    sc1, sh1 = _fold_bn(st1, R, g1, b1)

    y1p = jnp.pad(y1.reshape(B, H, W, midp), ((0, 0), (1, 1), (1, 1), (0, 0)))
    y2, st2 = _conv3x3_stats(y1p, sc1, sh1, w2, bt=bt, H=H, W=W)
    sc2, sh2 = _fold_bn(st2, R, g2, b2)

    y3, st3 = _conv1x1_stats(y2, w3, scale_in=sc2, shift_in=sh2, rows_per_tile=tm)
    sc3, sh3 = _fold_bn(st3, R, g3, b3)

    # BN3+ReLU epilogue + avg_pool(1,1) + reused teacher classifier (fused)
    h3, pred = _finalize_pool_cls(y3, sc3, sh3, clw, clb, bt=bt, HW=HW)

    trans_feat_s = h3.reshape(B, H, W, t_np)[..., :t_n]
    pred_feat_s = pred[:, :n_cls]
    return (jnp.transpose(trans_feat_s, (0, 3, 1, 2)),
            jnp.transpose(target, (0, 3, 1, 2)),
            pred_feat_s)


# --------------------------------------------------------------------------- #
# pure-JAX reference (mirrors the kernel's bf16 casting points) for the check
# --------------------------------------------------------------------------- #
def _im2col_3x3(x):
    B, H, W, C = x.shape
    xp = jnp.pad(x, ((0, 0), (1, 1), (1, 1), (0, 0)))
    cols = [xp[:, dy:dy + H, dx:dx + W, :] for dy in range(3) for dx in range(3)]
    return jnp.concatenate(cols, axis=-1).reshape(B * H * W, 9 * C)


def simkd_forward_ref(params, feat_s_nchw, feat_t_nchw):
    feat_s = jnp.transpose(feat_s_nchw, (0, 2, 3, 1))
    feat_t = jnp.transpose(feat_t_nchw, (0, 2, 3, 1))
    s_H, t_H = feat_s.shape[1], feat_t.shape[1]
    if s_H > t_H:
        source, target = adaptive_avg_pool2d_nhwc(feat_s, t_H, t_H), feat_t
    else:
        source, target = feat_s, adaptive_avg_pool2d_nhwc(feat_t, s_H, s_H)
    B, H, W, _ = source.shape
    R = B * H * W
    bf = jnp.bfloat16

    def bn_fold(y, g, b):
        mean = jnp.mean(y, axis=0, keepdims=True)
        var = jnp.maximum(jnp.mean(y * y, axis=0, keepdims=True) - mean * mean, 0.0)
        scale = g * jax.lax.rsqrt(var + EPS)
        return scale, b - mean * scale

    y1 = jnp.dot(source.reshape(R, -1).astype(bf), params["w1"].astype(bf),
                 preferred_element_type=jnp.float32)
    sc1, sh1 = bn_fold(y1, params["g1"], params["b1"])
    h1 = jnp.maximum(y1.astype(bf).astype(jnp.float32) * sc1 + sh1, 0.0).astype(bf)

    mid = h1.shape[-1]
    cols = _im2col_3x3(h1.reshape(B, H, W, mid))
    y2 = jnp.dot(cols, params["w2"].reshape(9 * mid, mid).astype(bf),
                 preferred_element_type=jnp.float32)
    sc2, sh2 = bn_fold(y2, params["g2"], params["b2"])
    x3 = jnp.maximum(y2.astype(bf).astype(jnp.float32) * sc2 + sh2, 0.0).astype(bf)

    y3 = jnp.dot(x3, params["w3"].astype(bf), preferred_element_type=jnp.float32)
    sc3, sh3 = bn_fold(y3, params["g3"], params["b3"])
    h3 = jnp.maximum(y3.astype(bf).astype(jnp.float32) * sc3 + sh3, 0.0)

    t_n = h3.shape[-1]
    trans_feat_s = h3.reshape(B, H, W, t_n)
    pooled = trans_feat_s.reshape(B, H * W, t_n).mean(axis=1)
    pred = pooled @ params["cls_w"] + params["cls_b"]
    return (jnp.transpose(trans_feat_s, (0, 3, 1, 2)),
            jnp.transpose(target, (0, 3, 1, 2)),
            pred)


# --------------------------------------------------------------------------- #
if __name__ == "__main__":
    # Small shapes consistent with the module: student feature (B, s_n, 16, 16),
    # teacher feature (B, t_n, 8, 8), factor=2, 10-way teacher classifier.
    B, s_n, t_n, factor, num_classes = 2, 4, 8, 2, 10
    s_H, t_H = 16, 8
    mid = t_n // factor

    key = jax.random.PRNGKey(0)
    ks = jax.random.split(key, 12)

    feat_s = jax.random.normal(ks[0], (B, s_n, s_H, s_H), jnp.float32)
    feat_t = jax.random.normal(ks[1], (B, t_n, t_H, t_H), jnp.float32)

    # Deterministic parameters (PyTorch conv weights transposed to matmul layout;
    # w2 kept as (kH, kW, Cin, Cout) for the in-kernel halo conv).
    params = {
        "w1": 0.3 * jax.random.normal(ks[2], (s_n, mid), jnp.float32),
        "g1": 1.0 + 0.1 * jax.random.normal(ks[3], (1, mid), jnp.float32),
        "b1": 0.1 * jax.random.normal(ks[4], (1, mid), jnp.float32),
        "w2": 0.2 * jax.random.normal(ks[5], (3, 3, mid, mid), jnp.float32),
        "g2": 1.0 + 0.1 * jax.random.normal(ks[6], (1, mid), jnp.float32),
        "b2": 0.1 * jax.random.normal(ks[7], (1, mid), jnp.float32),
        "w3": 0.3 * jax.random.normal(ks[8], (mid, t_n), jnp.float32),
        "g3": 1.0 + 0.1 * jax.random.normal(ks[9], (1, t_n), jnp.float32),
        "b3": 0.1 * jax.random.normal(ks[10], (1, t_n), jnp.float32),
        "cls_w": 0.2 * jax.random.normal(ks[11], (t_n, num_classes), jnp.float32),
        "cls_b": 0.05 * jnp.arange(num_classes, dtype=jnp.float32).reshape(1, num_classes),
    }

    # cap_rows=64 -> batch-tile of 1 at this toy size, exercising the multi-tile
    # grid, the cross-tile BN-stats reduction and the pooled-scratch/last-step
    # classifier path.
    fwd = jax.jit(functools.partial(simkd_forward, cap_rows=64))
    trans_s, trans_t, pred = fwd(params, feat_s, feat_t)
    jax.block_until_ready((trans_s, trans_t, pred))

    r_s, r_t, r_pred = simkd_forward_ref(params, feat_s, feat_t)
    assert trans_s.shape == (B, t_n, t_H, t_H)
    assert trans_t.shape == (B, t_n, t_H, t_H)
    assert pred.shape == (B, num_classes)
    assert jnp.allclose(trans_t, r_t, atol=1e-5, rtol=1e-5)
    assert jnp.allclose(trans_s, r_s, atol=2e-2, rtol=2e-2)
    assert jnp.allclose(pred, r_pred, atol=2e-2, rtol=2e-2)

    print("KERNEL_OK")
</pallas_src>

<mosaic_0001>
module attributes {stable_mosaic.version = 11 : i64} {
  func.func @_mm_bn_stats_kernel(%arg0: i32, %arg1: i32, %arg2: i32, %arg3: memref<64x128xbf16, #tpu.memory_space<vmem>>, %arg4: memref<128x128xbf16, #tpu.memory_space<vmem>>, %arg5: memref<64x128xbf16, #tpu.memory_space<vmem>>, %arg6: memref<1x2x128xf32, #tpu.memory_space<vmem>>, %arg7: memref<64x128xf32, #tpu.memory_space<vmem>>) attributes {dimension_semantics = [#tpu.dimension_semantics<parallel>, #tpu.dimension_semantics<parallel>, #tpu.dimension_semantics<arbitrary>], iteration_bounds = array<i64: 2, 1, 1>, scalar_prefetch = 0 : i64, scratch_operands = 1 : i64, tpu.core_type = #tpu.core_type<tc>, window_params = [{transform_indices = @transform_0, window_bounds = array<i64: 64, 128>}, {transform_indices = @transform_1, window_bounds = array<i64: 128, 128>}, {transform_indices = @transform_2, window_bounds = array<i64: 64, 128>}, {transform_indices = @transform_3, window_bounds = array<i64: 1, 2, 128>}]} {
    %c0_i32 = arith.constant 0 : i32
    %0 = arith.cmpi eq, %arg2, %c0_i32 : i32
    %1 = arith.extui %0 : i1 to i32
    %c0_i32_0 = arith.constant 0 : i32
    %2 = arith.cmpi ne, %1, %c0_i32_0 : i32
    scf.if %2 {
      %cst_10 = arith.constant 0.000000e+00 : f32
      %12 = vector.broadcast %cst_10 : f32 to vector<64x128xf32>
      %c0_11 = arith.constant 0 : index
      %c0_12 = arith.constant 0 : index
      %13 = vector.load %arg7[%c0_11, %c0_12] : memref<64x128xf32, #tpu.memory_space<vmem>>, vector<64x128xf32>
      tpu.vector_store %arg7[%c0_11, %c0_12], %12 {strides = array<i32>} : memref<64x128xf32, #tpu.memory_space<vmem>>, vector<64x128xf32>,
    } else {
    }
    %c0 = arith.constant 0 : index
    %c0_1 = arith.constant 0 : index
    %3 = vector.load %arg3[%c0, %c0_1] : memref<64x128xbf16, #tpu.memory_space<vmem>>, vector<64x128xbf16>
    %c0_2 = arith.constant 0 : index
    %c0_3 = arith.constant 0 : index
    %4 = vector.load %arg7[%c0_2, %c0_3] : memref<64x128xf32, #tpu.memory_space<vmem>>, vector<64x128xf32>
    %c0_4 = arith.constant 0 : index
    %c0_5 = arith.constant 0 : index
    %5 = vector.load %arg4[%c0_4, %c0_5] : memref<128x128xbf16, #tpu.memory_space<vmem>>, vector<128x128xbf16>
    %cst = arith.constant dense<0.000000e+00> : vector<64x128xf32>
    %6 = tpu.matmul %3, %5, %cst {dimension_numbers = #tpu.dot_dimension_numbers<[1], [0], [0], [1], [0, 0, 1, 1], [], []>} : vector<64x128xbf16>, vector<128x128xbf16>, vector<64x128xf32> -> vector<64x128xf32>
    %7 = arith.addf %4, %6 : vector<64x128xf32>
    %c0_6 = arith.constant 0 : index
    %c0_7 = arith.constant 0 : index
    %8 = vector.load %arg7[%c0_6, %c0_7] : memref<64x128xf32, #tpu.memory_space<vmem>>, vector<64x128xf32>
    tpu.vector_store %arg7[%c0_6, %c0_7], %7 {strides = array<i32>} : memref<64x128xf32, #tpu.memory_space<vmem>>, vector<64x128xf32>,
    %c0_i32_8 = arith.constant 0 : i32
    %9 = arith.cmpi eq, %arg2, %c0_i32_8 : i32
    %10 = arith.extui %9 : i1 to i32
    %c0_i32_9 = arith.constant 0 : i32
    %11 = arith.cmpi ne, %10, %c0_i32_9 : i32
    scf.if %11 {
      %c0_10 = arith.constant 0 : index
      %c0_11 = arith.constant 0 : index
      %12 = vector.load %arg7[%c0_10, %c0_11] : memref<64x128xf32, #tpu.memory_space<vmem>>, vector<64x128xf32>
      %13 = arith.truncf %12 : vector<64x128xf32> to vector<64x128xbf16>
      %c0_12 = arith.constant 0 : index
      %c0_13 = arith.constant 0 : index
      %14 = vector.load %arg5[%c0_12, %c0_13] : memref<64x128xbf16, #tpu.memory_space<vmem>>, vector<64x128xbf16>
      tpu.vector_store %arg5[%c0_12, %c0_13], %13 {strides = array<i32>} : memref<64x128xbf16, #tpu.memory_space<vmem>>, vector<64x128xbf16>,
      %cst_14 = arith.constant dense<0.000000e+00> : vector<128xf32>
      %15 = vector.multi_reduction <add>, %12, %cst_14 [0] : vector<64x128xf32> to vector<128xf32>
      %16 = vector.shape_cast %15 : vector<128xf32> to vector<1x128xf32>
      %17 = vector.shape_cast %16 : vector<1x128xf32> to vector<1x1x128xf32>
      %c0_15 = arith.constant 0 : index
      %c0_16 = arith.constant 0 : index
      %c0_17 = arith.constant 0 : index
      %18 = vector.load %arg6[%c0_15, %c0_16, %c0_17] : memref<1x2x128xf32, #tpu.memory_space<vmem>>, vector<1x1x128xf32>
      tpu.vector_store %arg6[%c0_15, %c0_16, %c0_17], %17 {strides = array<i32>} : memref<1x2x128xf32, #tpu.memory_space<vmem>>, vector<1x1x128xf32>,
      %19 = arith.mulf %12, %12 : vector<64x128xf32>
      %cst_18 = arith.constant dense<0.000000e+00> : vector<128xf32>
      %20 = vector.multi_reduction <add>, %19, %cst_18 [0] : vector<64x128xf32> to vector<128xf32>
      %21 = vector.shape_cast %20 : vector<128xf32> to vector<1x128xf32>
      %22 = vector.shape_cast %21 : vector<1x128xf32> to vector<1x1x128xf32>
      %c0_19 = arith.constant 0 : index
      %c1 = arith.constant 1 : index
      %c0_20 = arith.constant 0 : index
      %23 = vector.load %arg6[%c0_19, %c1, %c0_20] : memref<1x2x128xf32, #tpu.memory_space<vmem>>, vector<1x1x128xf32>
      tpu.vector_store %arg6[%c0_19, %c1, %c0_20], %22 {strides = array<i32>} : memref<1x2x128xf32, #tpu.memory_space<vmem>>, vector<1x1x128xf32>,
    } else {
    }
    return
  }
  func.func @transform_0(%arg0: i32, %arg1: i32, %arg2: i32) -> (i32, i32) {
    %c0_i32 = arith.constant 0 : i32
    return %arg0, %arg2 : i32, i32
  }
  func.func @transform_1(%arg0: i32, %arg1: i32, %arg2: i32) -> (i32, i32) {
    %c0_i32 = arith.constant 0 : i32
    return %arg2, %arg1 : i32, i32
  }
  func.func @transform_2(%arg0: i32, %arg1: i32, %arg2: i32) -> (i32, i32) {
    %c0_i32 = arith.constant 0 : i32
    return %arg0, %arg1 : i32, i32
  }
  func.func @transform_3(%arg0: i32, %arg1: i32, %arg2: i32) -> (i32, i32, i32) {
    %c0_i32 = arith.constant 0 : i32
    %c0_i32_0 = arith.constant 0 : i32
    return %arg0, %c0_i32, %arg1 : i32, i32, i32
  }
}

module attributes {stable_mosaic.version = 11 : i64} {
  func.func @_conv3x3_stats_kernel(%arg0: i32, %arg1: i32, %arg2: i32, %arg3: memref<1x10x10x128xbf16, #tpu.memory_space<vmem>>, %arg4: memref<1x10x10x128xf32, #tpu.memory_space<vmem>>, %arg5: memref<1x128xf32, #tpu.memory_space<vmem>>, %arg6: memref<1x128xf32, #tpu.memory_space<vmem>>, %arg7: memref<3x3x128x128xbf16, #tpu.memory_space<vmem>>, %arg8: memref<64x128xbf16, #tpu.memory_space<vmem>>, %arg9: memref<1x2x128xf32, #tpu.memory_space<vmem>>, %arg10: memref<64x128xf32, #tpu.memory_space<vmem>>) attributes {dimension_semantics = [#tpu.dimension_semantics<parallel>, #tpu.dimension_semantics<parallel>, #tpu.dimension_semantics<arbitrary>], iteration_bounds = array<i64: 2, 1, 1>, scalar_prefetch = 0 : i64, scratch_operands = 1 : i64, tpu.core_type = #tpu.core_type<tc>, window_params = [{transform_indices = @transform_0, window_bounds = array<i64: 1, 10, 10, 128>}, {pipeline_mode = #tpu.pipeline_mode<synchronous>, transform_indices = @transform_1, window_bounds = array<i64: 1, 10, 10, 128>}, {transform_indices = @transform_2, window_bounds = array<i64: 1, 128>}, {transform_indices = @transform_3, window_bounds = array<i64: 1, 128>}, {transform_indices = @transform_4, window_bounds = array<i64: 3, 3, 128, 128>}, {transform_indices = @transform_5, window_bounds = array<i64: 64, 128>}, {transform_indices = @transform_6, window_bounds = array<i64: 1, 2, 128>}]} {
    %c0_i32 = arith.constant 0 : i32
    %0 = arith.cmpi eq, %arg2, %c0_i32 : i32
    %1 = arith.extui %0 : i1 to i32
    %c0_i32_0 = arith.constant 0 : i32
    %2 = arith.cmpi ne, %1, %c0_i32_0 : i32
    scf.if %2 {
      %cst_93 = arith.constant 0.000000e+00 : f32
      %93 = vector.broadcast %cst_93 : f32 to vector<64x128xf32>
      %c0_94 = arith.constant 0 : index
      %c0_95 = arith.constant 0 : index
      %94 = vector.load %arg10[%c0_94, %c0_95] : memref<64x128xf32, #tpu.memory_space<vmem>>, vector<64x128xf32>
      tpu.vector_store %arg10[%c0_94, %c0_95], %93 {strides = array<i32>} : memref<64x128xf32, #tpu.memory_space<vmem>>, vector<64x128xf32>,
    } else {
    }
    %c0 = arith.constant 0 : index
    %c0_1 = arith.constant 0 : index
    %3 = vector.load %arg5[%c0, %c0_1] : memref<1x128xf32, #tpu.memory_space<vmem>>, vector<1x128xf32>
    %4 = vector.shape_cast %3 : vector<1x128xf32> to vector<1x1x1x128xf32>
    %c0_2 = arith.constant 0 : index
    %c0_3 = arith.constant 0 : index
    %5 = vector.load %arg6[%c0_2, %c0_3] : memref<1x128xf32, #tpu.memory_space<vmem>>, vector<1x128xf32>
    %6 = vector.shape_cast %5 : vector<1x128xf32> to vector<1x1x1x128xf32>
    %c0_4 = arith.constant 0 : index
    %c0_5 = arith.constant 0 : index
    %c0_6 = arith.constant 0 : index
    %c0_7 = arith.constant 0 : index
    %7 = vector.load %arg3[%c0_4, %c0_5, %c0_6, %c0_7] : memref<1x10x10x128xbf16, #tpu.memory_space<vmem>>, vector<1x10x10x128xbf16>
    %8 = arith.extf %7 : vector<1x10x10x128xbf16> to vector<1x10x10x128xf32>
    %9 = vector.broadcast %4 : vector<1x1x1x128xf32> to vector<1x10x10x128xf32>
    %10 = arith.mulf %8, %9 : vector<1x10x10x128xf32>
    %11 = vector.broadcast %6 : vector<1x1x1x128xf32> to vector<1x10x10x128xf32>
    %12 = arith.addf %10, %11 : vector<1x10x10x128xf32>
    %cst = arith.constant 0.000000e+00 : f32
    %13 = vector.broadcast %cst : f32 to vector<1x10x10x128xf32>
    %14 = arith.maximumf %12, %13 : vector<1x10x10x128xf32>
    %c0_8 = arith.constant 0 : index
    %c0_9 = arith.constant 0 : index
    %c0_10 = arith.constant 0 : index
    %c0_11 = arith.constant 0 : index
    %15 = vector.load %arg4[%c0_8, %c0_9, %c0_10, %c0_11] : memref<1x10x10x128xf32, #tpu.memory_space<vmem>>, vector<1x10x10x128xf32>
    %16 = arith.mulf %14, %15 : vector<1x10x10x128xf32>
    %17 = arith.truncf %16 : vector<1x10x10x128xf32> to vector<1x10x10x128xbf16>
    %18 = vector.extract_strided_slice %17 {offsets = [0, 0, 0, 0], sizes = [1, 8, 8, 128], strides = [1, 1, 1, 1]} : vector<1x10x10x128xbf16> to vector<1x8x8x128xbf16>
    %19 = vector.shape_cast %18 : vector<1x8x8x128xbf16> to vector<64x128xbf16>
    %c0_12 = arith.constant 0 : index
    %c0_13 = arith.constant 0 : index
    %20 = vector.load %arg10[%c0_12, %c0_13] : memref<64x128xf32, #tpu.memory_space<vmem>>, vector<64x128xf32>
    %c0_14 = arith.constant 0 : index
    %c0_15 = arith.constant 0 : index
    %c0_16 = arith.constant 0 : index
    %c0_17 = arith.constant 0 : index
    %21 = vector.load %arg7[%c0_14, %c0_15, %c0_16, %c0_17] : memref<3x3x128x128xbf16, #tpu.memory_space<vmem>>, vector<1x1x128x128xbf16>
    %22 = vector.shape_cast %21 : vector<1x1x128x128xbf16> to vector<128x128xbf16>
    %cst_18 = arith.constant dense<0.000000e+00> : vector<64x128xf32>
    %23 = tpu.matmul %19, %22, %cst_18 {dimension_numbers = #tpu.dot_dimension_numbers<[1], [0], [0], [1], [0, 0, 1, 1], [], []>} : vector<64x128xbf16>, vector<128x128xbf16>, vector<64x128xf32> -> vector<64x128xf32>
    %24 = arith.addf %20, %23 : vector<64x128xf32>
    %c0_19 = arith.constant 0 : index
    %c0_20 = arith.constant 0 : index
    %25 = vector.load %arg10[%c0_19, %c0_20] : memref<64x128xf32, #tpu.memory_space<vmem>>, vector<64x128xf32>
    tpu.vector_store %arg10[%c0_19, %c0_20], %24 {strides = array<i32>} : memref<64x128xf32, #tpu.memory_space<vmem>>, vector<64x128xf32>,
    %26 = vector.extract_strided_slice %17 {offsets = [0, 0, 1, 0], sizes = [1, 8, 8, 128], strides = [1, 1, 1, 1]} : vector<1x10x10x128xbf16> to vector<1x8x8x128xbf16>
    %27 = vector.shape_cast %26 : vector<1x8x8x128xbf16> to vector<64x128xbf16>
    %c0_21 = arith.constant 0 : index
    %c0_22 = arith.constant 0 : index
    %28 = vector.load %arg10[%c0_21, %c0_22] : memref<64x128xf32, #tpu.memory_space<vmem>>, vector<64x128xf32>
    %c0_23 = arith.constant 0 : index
    %c1 = arith.constant 1 : index
    %c0_24 = arith.constant 0 : index
    %c0_25 = arith.constant 0 : index
    %29 = vector.load %arg7[%c0_23, %c1, %c0_24, %c0_25] : memref<3x3x128x128xbf16, #tpu.memory_space<vmem>>, vector<1x1x128x128xbf16>
    %30 = vector.shape_cast %29 : vector<1x1x128x128xbf16> to vector<128x128xbf16>
    %cst_26 = arith.constant dense<0.000000e+00> : vector<64x128xf32>
    %31 = tpu.matmul %27, %30, %cst_26 {dimension_numbers = #tpu.dot_dimension_numbers<[1], [0], [0], [1], [0, 0, 1, 1], [], []>} : vector<64x128xbf16>, vector<128x128xbf16>, vector<64x128xf32> -> vector<64x128xf32>
    %32 = arith.addf %28, %31 : vector<64x128xf32>
    %c0_27 = arith.constant 0 : index
    %c0_28 = arith.constant 0 : index
    %33 = vector.load %arg10[%c0_27, %c0_28] : memref<64x128xf32, #tpu.memory_space<vmem>>, vector<64x128xf32>
    tpu.vector_store %arg10[%c0_27, %c0_28], %32 {strides = array<i32>} : memref<64x128xf32, #tpu.memory_space<vmem>>, vector<64x128xf32>,
    %34 = vector.extract_strided_slice %17 {offsets = [0, 0, 2, 0], sizes = [1, 8, 8, 128], strides = [1, 1, 1, 1]} : vector<1x10x10x128xbf16> to vector<1x8x8x128xbf16>
    %35 = vector.shape_cast %34 : vector<1x8x8x128xbf16> to vector<64x128xbf16>
    %c0_29 = arith.constant 0 : index
    %c0_30 = arith.constant 0 : index
    %36 = vector.load %arg10[%c0_29, %c0_30] : memref<64x128xf32, #tpu.memory_space<vmem>>, vector<64x128xf32>
    %c0_31 = arith.constant 0 : index
    %c2 = arith.constant 2 : index
    %c0_32 = arith.constant 0 : index
    %c0_33 = arith.constant 0 : index
    %37 = vector.load %arg7[%c0_31, %c2, %c0_32, %c0_33] : memref<3x3x128x128xbf16, #tpu.memory_space<vmem>>, vector<1x1x128x128xbf16>
    %38 = vector.shape_cast %37 : vector<1x1x128x128xbf16> to vector<128x128xbf16>
    %cst_34 = arith.constant dense<0.000000e+00> : vector<64x128xf32>
    %39 = tpu.matmul %35, %38, %cst_34 {dimension_numbers = #tpu.dot_dimension_numbers<[1], [0], [0], [1], [0, 0, 1, 1], [], []>} : vector<64x128xbf16>, vector<128x128xbf16>, vector<64x128xf32> -> vector<64x128xf32>
    %40 = arith.addf %36, %39 : vector<64x128xf32>
    %c0_35 = arith.constant 0 : index
    %c0_36 = arith.constant 0 : index
    %41 = vector.load %arg10[%c0_35, %c0_36] : memref<64x128xf32, #tpu.memory_space<vmem>>, vector<64x128xf32>
    tpu.vector_store %arg10[%c0_35, %c0_36], %40 {strides = array<i32>} : memref<64x128xf32, #tpu.memory_space<vmem>>, vector<64x128xf32>,
    %42 = vector.extract_strided_slice %17 {offsets = [0, 1, 0, 0], sizes = [1, 8, 8, 128], strides = [1, 1, 1, 1]} : vector<1x10x10x128xbf16> to vector<1x8x8x128xbf16>
    %43 = vector.shape_cast %42 : vector<1x8x8x128xbf16> to vector<64x128xbf16>
    %c0_37 = arith.constant 0 : index
    %c0_38 = arith.constant 0 : index
    %44 = vector.load %arg10[%c0_37, %c0_38] : memref<64x128xf32, #tpu.memory_space<vmem>>, vector<64x128xf32>
    %c1_39 = arith.constant 1 : index
    %c0_40 = arith.constant 0 : index
    %c0_41 = arith.constant 0 : index
    %c0_42 = arith.constant 0 : index
    %45 = vector.load %arg7[%c1_39, %c0_40, %c0_41, %c0_42] : memref<3x3x128x128xbf16, #tpu.memory_space<vmem>>, vector<1x1x128x128xbf16>
    %46 = vector.shape_cast %45 : vector<1x1x128x128xbf16> to vector<128x128xbf16>
    %cst_43 = arith.constant dense<0.000000e+00> : vector<64x128xf32>
    %47 = tpu.matmul %43, %46, %cst_43 {dimension_numbers = #tpu.dot_dimension_numbers<[1], [0], [0], [1], [0, 0, 1, 1], [], []>} : vector<64x128xbf16>, vector<128x128xbf16>, vector<64x128xf32> -> vector<64x128xf32>
    %48 = arith.addf %44, %47 : vector<64x128xf32>
    %c0_44 = arith.constant 0 : index
    %c0_45 = arith.constant 0 : index
    %49 = vector.load %arg10[%c0_44, %c0_45] : memref<64x128xf32, #tpu.memory_space<vmem>>, vector<64x128xf32>
    tpu.vector_store %arg10[%c0_44, %c0_45], %48 {strides = array<i32>} : memref<64x128xf32, #tpu.memory_space<vmem>>, vector<64x128xf32>,
    %50 = vector.extract_strided_slice %17 {offsets = [0, 1, 1, 0], sizes = [1, 8, 8, 128], strides = [1, 1, 1, 1]} : vector<1x10x10x128xbf16> to vector<1x8x8x128xbf16>
    %51 = vector.shape_cast %50 : vector<1x8x8x128xbf16> to vector<64x128xbf16>
    %c0_46 = arith.constant 0 : index
    %c0_47 = arith.constant 0 : index
    %52 = vector.load %arg10[%c0_46, %c0_47] : memref<64x128xf32, #tpu.memory_space<vmem>>, vector<64x128xf32>
    %c1_48 = arith.constant 1 : index
    %c1_49 = arith.constant 1 : index
    %c0_50 = arith.constant 0 : index
    %c0_51 = arith.constant 0 : index
    %53 = vector.load %arg7[%c1_48, %c1_49, %c0_50, %c0_51] : memref<3x3x128x128xbf16, #tpu.memory_space<vmem>>, vector<1x1x128x128xbf16>
    %54 = vector.shape_cast %53 : vector<1x1x128x128xbf16> to vector<128x128xbf16>
    %cst_52 = arith.constant dense<0.000000e+00> : vector<64x128xf32>
    %55 = tpu.matmul %51, %54, %cst_52 {dimension_numbers = #tpu.dot_dimension_numbers<[1], [0], [0], [1], [0, 0, 1, 1], [], []>} : vector<64x128xbf16>, vector<128x128xbf16>, vector<64x128xf32> -> vector<64x128xf32>
    %56 = arith.addf %52, %55 : vector<64x128xf32>
    %c0_53 = arith.constant 0 : index
    %c0_54 = arith.constant 0 : index
    %57 = vector.load %arg10[%c0_53, %c0_54] : memref<64x128xf32, #tpu.memory_space<vmem>>, vector<64x128xf32>
    tpu.vector_store %arg10[%c0_53, %c0_54], %56 {strides = array<i32>} : memref<64x128xf32, #tpu.memory_space<vmem>>, vector<64x128xf32>,
    %58 = vector.extract_strided_slice %17 {offsets = [0, 1, 2, 0], sizes = [1, 8, 8, 128], strides = [1, 1, 1, 1]} : vector<1x10x10x128xbf16> to vector<1x8x8x128xbf16>
    %59 = vector.shape_cast %58 : vector<1x8x8x128xbf16> to vector<64x128xbf16>
    %c0_55 = arith.constant 0 : index
    %c0_56 = arith.constant 0 : index
    %60 = vector.load %arg10[%c0_55, %c0_56] : memref<64x128xf32, #tpu.memory_space<vmem>>, vector<64x128xf32>
    %c1_57 = arith.constant 1 : index
    %c2_58 = arith.constant 2 : index
    %c0_59 = arith.constant 0 : index
    %c0_60 = arith.constant 0 : index
    %61 = vector.load %arg7[%c1_57, %c2_58, %c0_59, %c0_60] : memref<3x3x128x128xbf16, #tpu.memory_space<vmem>>, vector<1x1x128x128xbf16>
    %62 = vector.shape_cast %61 : vector<1x1x128x128xbf16> to vector<128x128xbf16>
    %cst_61 = arith.constant dense<0.000000e+00> : vector<64x128xf32>
    %63 = tpu.matmul %59, %62, %cst_61 {dimension_numbers = #tpu.dot_dimension_numbers<[1], [0], [0], [1], [0, 0, 1, 1], [], []>} : vector<64x128xbf16>, vector<128x128xbf16>, vector<64x128xf32> -> vector<64x128xf32>
    %64 = arith.addf %60, %63 : vector<64x128xf32>
    %c0_62 = arith.constant 0 : index
    %c0_63 = arith.constant 0 : index
    %65 = vector.load %arg10[%c0_62, %c0_63] : memref<64x128xf32, #tpu.memory_space<vmem>>, vector<64x128xf32>
    tpu.vector_store %arg10[%c0_62, %c0_63], %64 {strides = array<i32>} : memref<64x128xf32, #tpu.memory_space<vmem>>, vector<64x128xf32>,
    %66 = vector.extract_strided_slice %17 {offsets = [0, 2, 0, 0], sizes = [1, 8, 8, 128], strides = [1, 1, 1, 1]} : vector<1x10x10x128xbf16> to vector<1x8x8x128xbf16>
    %67 = vector.shape_cast %66 : vector<1x8x8x128xbf16> to vector<64x128xbf16>
    %c0_64 = arith.constant 0 : index
    %c0_65 = arith.constant 0 : index
    %68 = vector.load %arg10[%c0_64, %c0_65] : memref<64x128xf32, #tpu.memory_space<vmem>>, vector<64x128xf32>
    %c2_66 = arith.constant 2 : index
    %c0_67 = arith.constant 0 : index
    %c0_68 = arith.constant 0 : index
    %c0_69 = arith.constant 0 : index
    %69 = vector.load %arg7[%c2_66, %c0_67, %c0_68, %c0_69] : memref<3x3x128x128xbf16, #tpu.memory_space<vmem>>, vector<1x1x128x128xbf16>
    %70 = vector.shape_cast %69 : vector<1x1x128x128xbf16> to vector<128x128xbf16>
    %cst_70 = arith.constant dense<0.000000e+00> : vector<64x128xf32>
    %71 = tpu.matmul %67, %70, %cst_70 {dimension_numbers = #tpu.dot_dimension_numbers<[1], [0], [0], [1], [0, 0, 1, 1], [], []>} : vector<64x128xbf16>, vector<128x128xbf16>, vector<64x128xf32> -> vector<64x128xf32>
    %72 = arith.addf %68, %71 : vector<64x128xf32>
    %c0_71 = arith.constant 0 : index
    %c0_72 = arith.constant 0 : index
    %73 = vector.load %arg10[%c0_71, %c0_72] : memref<64x128xf32, #tpu.memory_space<vmem>>, vector<64x128xf32>
    tpu.vector_store %arg10[%c0_71, %c0_72], %72 {strides = array<i32>} : memref<64x128xf32, #tpu.memory_space<vmem>>, vector<64x128xf32>,
    %74 = vector.extract_strided_slice %17 {offsets = [0, 2, 1, 0], sizes = [1, 8, 8, 128], strides = [1, 1, 1, 1]} : vector<1x10x10x128xbf16> to vector<1x8x8x128xbf16>
    %75 = vector.shape_cast %74 : vector<1x8x8x128xbf16> to vector<64x128xbf16>
    %c0_73 = arith.constant 0 : index
    %c0_74 = arith.constant 0 : index
    %76 = vector.load %arg10[%c0_73, %c0_74] : memref<64x128xf32, #tpu.memory_space<vmem>>, vector<64x128xf32>
    %c2_75 = arith.constant 2 : index
    %c1_76 = arith.constant 1 : index
    %c0_77 = arith.constant 0 : index
    %c0_78 = arith.constant 0 : index
    %77 = vector.load %arg7[%c2_75, %c1_76, %c0_77, %c0_78] : memref<3x3x128x128xbf16, #tpu.memory_space<vmem>>, vector<1x1x128x128xbf16>
    %78 = vector.shape_cast %77 : vector<1x1x128x128xbf16> to vector<128x128xbf16>
    %cst_79 = arith.constant dense<0.000000e+00> : vector<64x128xf32>
    %79 = tpu.matmul %75, %78, %cst_79 {dimension_numbers = #tpu.dot_dimension_numbers<[1], [0], [0], [1], [0, 0, 1, 1], [], []>} : vector<64x128xbf16>, vector<128x128xbf16>, vector<64x128xf32> -> vector<64x128xf32>
    %80 = arith.addf %76, %79 : vector<64x128xf32>
    %c0_80 = arith.constant 0 : index
    %c0_81 = arith.constant 0 : index
    %81 = vector.load %arg10[%c0_80, %c0_81] : memref<64x128xf32, #tpu.memory_space<vmem>>, vector<64x128xf32>
    tpu.vector_store %arg10[%c0_80, %c0_81], %80 {strides = array<i32>} : memref<64x128xf32, #tpu.memory_space<vmem>>, vector<64x128xf32>,
    %82 = vector.extract_strided_slice %17 {offsets = [0, 2, 2, 0], sizes = [1, 8, 8, 128], strides = [1, 1, 1, 1]} : vector<1x10x10x128xbf16> to vector<1x8x8x128xbf16>
    %83 = vector.shape_cast %82 : vector<1x8x8x128xbf16> to vector<64x128xbf16>
    %c0_82 = arith.constant 0 : index
    %c0_83 = arith.constant 0 : index
    %84 = vector.load %arg10[%c0_82, %c0_83] : memref<64x128xf32, #tpu.memory_space<vmem>>, vector<64x128xf32>
    %c2_84 = arith.constant 2 : index
    %c2_85 = arith.constant 2 : index
    %c0_86 = arith.constant 0 : index
    %c0_87 = arith.constant 0 : index
    %85 = vector.load %arg7[%c2_84, %c2_85, %c0_86, %c0_87] : memref<3x3x128x128xbf16, #tpu.memory_space<vmem>>, vector<1x1x128x128xbf16>
    %86 = vector.shape_cast %85 : vector<1x1x128x128xbf16> to vector<128x128xbf16>
    %cst_88 = arith.constant dense<0.000000e+00> : vector<64x128xf32>
    %87 = tpu.matmul %83, %86, %cst_88 {dimension_numbers = #tpu.dot_dimension_numbers<[1], [0], [0], [1], [0, 0, 1, 1], [], []>} : vector<64x128xbf16>, vector<128x128xbf16>, vector<64x128xf32> -> vector<64x128xf32>
    %88 = arith.addf %84, %87 : vector<64x128xf32>
    %c0_89 = arith.constant 0 : index
    %c0_90 = arith.constant 0 : index
    %89 = vector.load %arg10[%c0_89, %c0_90] : memref<64x128xf32, #tpu.memory_space<vmem>>, vector<64x128xf32>
    tpu.vector_store %arg10[%c0_89, %c0_90], %88 {strides = array<i32>} : memref<64x128xf32, #tpu.memory_space<vmem>>, vector<64x128xf32>,
    %c0_i32_91 = arith.constant 0 : i32
    %90 = arith.cmpi eq, %arg2, %c0_i32_91 : i32
    %91 = arith.extui %90 : i1 to i32
    %c0_i32_92 = arith.constant 0 : i32
    %92 = arith.cmpi ne, %91, %c0_i32_92 : i32
    scf.if %92 {
      %c0_93 = arith.constant 0 : index
      %c0_94 = arith.constant 0 : index
      %93 = vector.load %arg10[%c0_93, %c0_94] : memref<64x128xf32, #tpu.memory_space<vmem>>, vector<64x128xf32>
      %94 = arith.truncf %93 : vector<64x128xf32> to vector<64x128xbf16>
      %c0_95 = arith.constant 0 : index
      %c0_96 = arith.constant 0 : index
      %95 = vector.load %arg8[%c0_95, %c0_96] : memref<64x128xbf16, #tpu.memory_space<vmem>>, vector<64x128xbf16>
      tpu.vector_store %arg8[%c0_95, %c0_96], %94 {strides = array<i32>} : memref<64x128xbf16, #tpu.memory_space<vmem>>, vector<64x128xbf16>,
      %cst_97 = arith.constant dense<0.000000e+00> : vector<128xf32>
      %96 = vector.multi_reduction <add>, %93, %cst_97 [0] : vector<64x128xf32> to vector<128xf32>
      %97 = vector.shape_cast %96 : vector<128xf32> to vector<1x128xf32>
      %98 = vector.shape_cast %97 : vector<1x128xf32> to vector<1x1x128xf32>
      %c0_98 = arith.constant 0 : index
      %c0_99 = arith.constant 0 : index
      %c0_100 = arith.constant 0 : index
      %99 = vector.load %arg9[%c0_98, %c0_99, %c0_100] : memref<1x2x128xf32, #tpu.memory_space<vmem>>, vector<1x1x128xf32>
      tpu.vector_store %arg9[%c0_98, %c0_99, %c0_100], %98 {strides = array<i32>} : memref<1x2x128xf32, #tpu.memory_space<vmem>>, vector<1x1x128xf32>,
      %100 = arith.mulf %93, %93 : vector<64x128xf32>
      %cst_101 = arith.constant dense<0.000000e+00> : vector<128xf32>
      %101 = vector.multi_reduction <add>, %100, %cst_101 [0] : vector<64x128xf32> to vector<128xf32>
      %102 = vector.shape_cast %101 : vector<128xf32> to vector<1x128xf32>
      %103 = vector.shape_cast %102 : vector<1x128xf32> to vector<1x1x128xf32>
      %c0_102 = arith.constant 0 : index
      %c1_103 = arith.constant 1 : index
      %c0_104 = arith.constant 0 : index
      %104 = vector.load %arg9[%c0_102, %c1_103, %c0_104] : memref<1x2x128xf32, #tpu.memory_space<vmem>>, vector<1x1x128xf32>
      tpu.vector_store %arg9[%c0_102, %c1_103, %c0_104], %103 {strides = array<i32>} : memref<1x2x128xf32, #tpu.memory_space<vmem>>, vector<1x1x128xf32>,
    } else {
    }
    return
  }
  func.func @transform_0(%arg0: i32, %arg1: i32, %arg2: i32) -> (i32, i32, i32, i32) {
    %c0_i32 = arith.constant 0 : i32
    %c0_i32_0 = arith.constant 0 : i32
    %c0_i32_1 = arith.constant 0 : i32
    return %arg0, %c0_i32, %c0_i32_0, %arg2 : i32, i32, i32, i32
  }
  func.func @transform_1(%arg0: i32, %arg1: i32, %arg2: i32) -> (i32, i32, i32, i32) {
    %c0_i32 = arith.constant 0 : i32
    %c0_i32_0 = arith.constant 0 : i32
    %c0_i32_1 = arith.constant 0 : i32
    %c0_i32_2 = arith.constant 0 : i32
    %c0_i32_3 = arith.constant 0 : i32
    return %c0_i32, %c0_i32_0, %c0_i32_1, %c0_i32_2 : i32, i32, i32, i32
  }
  func.func @transform_2(%arg0: i32, %arg1: i32, %arg2: i32) -> (i32, i32) {
    %c0_i32 = arith.constant 0 : i32
    %c0_i32_0 = arith.constant 0 : i32
    return %c0_i32, %arg2 : i32, i32
  }
  func.func @transform_3(%arg0: i32, %arg1: i32, %arg2: i32) -> (i32, i32) {
    %c0_i32 = arith.constant 0 : i32
    %c0_i32_0 = arith.constant 0 : i32
    return %c0_i32, %arg2 : i32, i32
  }
  func.func @transform_4(%arg0: i32, %arg1: i32, %arg2: i32) -> (i32, i32, i32, i32) {
    %c0_i32 = arith.constant 0 : i32
    %c0_i32_0 = arith.constant 0 : i32
    %c0_i32_1 = arith.constant 0 : i32
    return %c0_i32, %c0_i32_0, %arg2, %arg1 : i32, i32, i32, i32
  }
  func.func @transform_5(%arg0: i32, %arg1: i32, %arg2: i32) -> (i32, i32) {
    %c0_i32 = arith.constant 0 : i32
    return %arg0, %arg1 : i32, i32
  }
  func.func @transform_6(%arg0: i32, %arg1: i32, %arg2: i32) -> (i32, i32, i32) {
    %c0_i32 = arith.constant 0 : i32
    %c0_i32_0 = arith.constant 0 : i32
    return %arg0, %c0_i32, %arg1 : i32, i32, i32
  }
}

module attributes {stable_mosaic.version = 11 : i64} {
  func.func @_mm_bn_stats_kernel(%arg0: i32, %arg1: i32, %arg2: i32, %arg3: memref<64x128xbf16, #tpu.memory_space<vmem>>, %arg4: memref<1x128xf32, #tpu.memory_space<vmem>>, %arg5: memref<1x128xf32, #tpu.memory_space<vmem>>, %arg6: memref<128x128xbf16, #tpu.memory_space<vmem>>, %arg7: memref<64x128xbf16, #tpu.memory_space<vmem>>, %arg8: memref<1x2x128xf32, #tpu.memory_space<vmem>>, %arg9: memref<64x128xf32, #tpu.memory_space<vmem>>) attributes {dimension_semantics = [#tpu.dimension_semantics<parallel>, #tpu.dimension_semantics<parallel>, #tpu.dimension_semantics<arbitrary>], iteration_bounds = array<i64: 2, 1, 1>, scalar_prefetch = 0 : i64, scratch_operands = 1 : i64, tpu.core_type = #tpu.core_type<tc>, window_params = [{transform_indices = @transform_0, window_bounds = array<i64: 64, 128>}, {transform_indices = @transform_1, window_bounds = array<i64: 1, 128>}, {transform_indices = @transform_2, window_bounds = array<i64: 1, 128>}, {transform_indices = @transform_3, window_bounds = array<i64: 128, 128>}, {transform_indices = @transform_4, window_bounds = array<i64: 64, 128>}, {transform_indices = @transform_5, window_bounds = array<i64: 1, 2, 128>}]} {
    %c0_i32 = arith.constant 0 : i32
    %0 = arith.cmpi eq, %arg2, %c0_i32 : i32
    %1 = arith.extui %0 : i1 to i32
    %c0_i32_0 = arith.constant 0 : i32
    %2 = arith.cmpi ne, %1, %c0_i32_0 : i32
    scf.if %2 {
      %cst_15 = arith.constant 0.000000e+00 : f32
      %22 = vector.broadcast %cst_15 : f32 to vector<64x128xf32>
      %c0_16 = arith.constant 0 : index
      %c0_17 = arith.constant 0 : index
      %23 = vector.load %arg9[%c0_16, %c0_17] : memref<64x128xf32, #tpu.memory_space<vmem>>, vector<64x128xf32>
      tpu.vector_store %arg9[%c0_16, %c0_17], %22 {strides = array<i32>} : memref<64x128xf32, #tpu.memory_space<vmem>>, vector<64x128xf32>,
    } else {
    }
    %c0 = arith.constant 0 : index
    %c0_1 = arith.constant 0 : index
    %3 = vector.load %arg3[%c0, %c0_1] : memref<64x128xbf16, #tpu.memory_space<vmem>>, vector<64x128xbf16>
    %4 = arith.extf %3 : vector<64x128xbf16> to vector<64x128xf32>
    %c0_2 = arith.constant 0 : index
    %c0_3 = arith.constant 0 : index
    %5 = vector.load %arg4[%c0_2, %c0_3] : memref<1x128xf32, #tpu.memory_space<vmem>>, vector<1x128xf32>
    %6 = vector.broadcast %5 : vector<1x128xf32> to vector<64x128xf32>
    %7 = arith.mulf %4, %6 : vector<64x128xf32>
    %c0_4 = arith.constant 0 : index
    %c0_5 = arith.constant 0 : index
    %8 = vector.load %arg5[%c0_4, %c0_5] : memref<1x128xf32, #tpu.memory_space<vmem>>, vector<1x128xf32>
    %9 = vector.broadcast %8 : vector<1x128xf32> to vector<64x128xf32>
    %10 = arith.addf %7, %9 : vector<64x128xf32>
    %cst = arith.constant 0.000000e+00 : f32
    %11 = vector.broadcast %cst : f32 to vector<64x128xf32>
    %12 = arith.maximumf %10, %11 : vector<64x128xf32>
    %13 = arith.truncf %12 : vector<64x128xf32> to vector<64x128xbf16>
    %c0_6 = arith.constant 0 : index
    %c0_7 = arith.constant 0 : index
    %14 = vector.load %arg9[%c0_6, %c0_7] : memref<64x128xf32, #tpu.memory_space<vmem>>, vector<64x128xf32>
    %c0_8 = arith.constant 0 : index
    %c0_9 = arith.constant 0 : index
    %15 = vector.load %arg6[%c0_8, %c0_9] : memref<128x128xbf16, #tpu.memory_space<vmem>>, vector<128x128xbf16>
    %cst_10 = arith.constant dense<0.000000e+00> : vector<64x128xf32>
    %16 = tpu.matmul %13, %15, %cst_10 {dimension_numbers = #tpu.dot_dimension_numbers<[1], [0], [0], [1], [0, 0, 1, 1], [], []>} : vector<64x128xbf16>, vector<128x128xbf16>, vector<64x128xf32> -> vector<64x128xf32>
    %17 = arith.addf %14, %16 : vector<64x128xf32>
    %c0_11 = arith.constant 0 : index
    %c0_12 = arith.constant 0 : index
    %18 = vector.load %arg9[%c0_11, %c0_12] : memref<64x128xf32, #tpu.memory_space<vmem>>, vector<64x128xf32>
    tpu.vector_store %arg9[%c0_11, %c0_12], %17 {strides = array<i32>} : memref<64x128xf32, #tpu.memory_space<vmem>>, vector<64x128xf32>,
    %c0_i32_13 = arith.constant 0 : i32
    %19 = arith.cmpi eq, %arg2, %c0_i32_13 : i32
    %20 = arith.extui %19 : i1 to i32
    %c0_i32_14 = arith.constant 0 : i32
    %21 = arith.cmpi ne, %20, %c0_i32_14 : i32
    scf.if %21 {
      %c0_15 = arith.constant 0 : index
      %c0_16 = arith.constant 0 : index
      %22 = vector.load %arg9[%c0_15, %c0_16] : memref<64x128xf32, #tpu.memory_space<vmem>>, vector<64x128xf32>
      %23 = arith.truncf %22 : vector<64x128xf32> to vector<64x128xbf16>
      %c0_17 = arith.constant 0 : index
      %c0_18 = arith.constant 0 : index
      %24 = vector.load %arg7[%c0_17, %c0_18] : memref<64x128xbf16, #tpu.memory_space<vmem>>, vector<64x128xbf16>
      tpu.vector_store %arg7[%c0_17, %c0_18], %23 {strides = array<i32>} : memref<64x128xbf16, #tpu.memory_space<vmem>>, vector<64x128xbf16>,
      %cst_19 = arith.constant dense<0.000000e+00> : vector<128xf32>
      %25 = vector.multi_reduction <add>, %22, %cst_19 [0] : vector<64x128xf32> to vector<128xf32>
      %26 = vector.shape_cast %25 : vector<128xf32> to vector<1x128xf32>
      %27 = vector.shape_cast %26 : vector<1x128xf32> to vector<1x1x128xf32>
      %c0_20 = arith.constant 0 : index
      %c0_21 = arith.constant 0 : index
      %c0_22 = arith.constant 0 : index
      %28 = vector.load %arg8[%c0_20, %c0_21, %c0_22] : memref<1x2x128xf32, #tpu.memory_space<vmem>>, vector<1x1x128xf32>
      tpu.vector_store %arg8[%c0_20, %c0_21, %c0_22], %27 {strides = array<i32>} : memref<1x2x128xf32, #tpu.memory_space<vmem>>, vector<1x1x128xf32>,
      %29 = arith.mulf %22, %22 : vector<64x128xf32>
      %cst_23 = arith.constant dense<0.000000e+00> : vector<128xf32>
      %30 = vector.multi_reduction <add>, %29, %cst_23 [0] : vector<64x128xf32> to vector<128xf32>
      %31 = vector.shape_cast %30 : vector<128xf32> to vector<1x128xf32>
      %32 = vector.shape_cast %31 : vector<1x128xf32> to vector<1x1x128xf32>
      %c0_24 = arith.constant 0 : index
      %c1 = arith.constant 1 : index
      %c0_25 = arith.constant 0 : index
      %33 = vector.load %arg8[%c0_24, %c1, %c0_25] : memref<1x2x128xf32, #tpu.memory_space<vmem>>, vector<1x1x128xf32>
      tpu.vector_store %arg8[%c0_24, %c1, %c0_25], %32 {strides = array<i32>} : memref<1x2x128xf32, #tpu.memory_space<vmem>>, vector<1x1x128xf32>,
    } else {
    }
    return
  }
  func.func @transform_0(%arg0: i32, %arg1: i32, %arg2: i32) -> (i32, i32) {
    %c0_i32 = arith.constant 0 : i32
    return %arg0, %arg2 : i32, i32
  }
  func.func @transform_1(%arg0: i32, %arg1: i32, %arg2: i32) -> (i32, i32) {
    %c0_i32 = arith.constant 0 : i32
    %c0_i32_0 = arith.constant 0 : i32
    return %c0_i32, %arg2 : i32, i32
  }
  func.func @transform_2(%arg0: i32, %arg1: i32, %arg2: i32) -> (i32, i32) {
    %c0_i32 = arith.constant 0 : i32
    %c0_i32_0 = arith.constant 0 : i32
    return %c0_i32, %arg2 : i32, i32
  }
  func.func @transform_3(%arg0: i32, %arg1: i32, %arg2: i32) -> (i32, i32) {
    %c0_i32 = arith.constant 0 : i32
    return %arg2, %arg1 : i32, i32
  }
  func.func @transform_4(%arg0: i32, %arg1: i32, %arg2: i32) -> (i32, i32) {
    %c0_i32 = arith.constant 0 : i32
    return %arg0, %arg1 : i32, i32
  }
  func.func @transform_5(%arg0: i32, %arg1: i32, %arg2: i32) -> (i32, i32, i32) {
    %c0_i32 = arith.constant 0 : i32
    %c0_i32_0 = arith.constant 0 : i32
    return %arg0, %c0_i32, %arg1 : i32, i32, i32
  }
}

module attributes {stable_mosaic.version = 11 : i64} {
  func.func @_finalize_kernel(%arg0: i32, %arg1: memref<64x128xbf16, #tpu.memory_space<vmem>>, %arg2: memref<1x128xf32, #tpu.memory_space<vmem>>, %arg3: memref<1x128xf32, #tpu.memory_space<vmem>>, %arg4: memref<128x128xf32, #tpu.memory_space<vmem>>, %arg5: memref<1x128xf32, #tpu.memory_space<vmem>>, %arg6: memref<64x128xf32, #tpu.memory_space<vmem>>, %arg7: memref<2x128xf32, #tpu.memory_space<vmem>>, %arg8: memref<2x1x128xf32, #tpu.memory_space<vmem>>) attributes {dimension_semantics = [#tpu.dimension_semantics<arbitrary>], iteration_bounds = array<i64: 2>, scalar_prefetch = 0 : i64, scratch_operands = 1 : i64, tpu.core_type = #tpu.core_type<tc>, window_params = [{transform_indices = @transform_0, window_bounds = array<i64: 64, 128>}, {pipeline_mode = #tpu.pipeline_mode<synchronous>, transform_indices = @transform_1, window_bounds = array<i64: 1, 128>}, {pipeline_mode = #tpu.pipeline_mode<synchronous>, transform_indices = @transform_2, window_bounds = array<i64: 1, 128>}, {pipeline_mode = #tpu.pipeline_mode<synchronous>, transform_indices = @transform_3, window_bounds = array<i64: 128, 128>}, {pipeline_mode = #tpu.pipeline_mode<synchronous>, transform_indices = @transform_4, window_bounds = array<i64: 1, 128>}, {transform_indices = @transform_5, window_bounds = array<i64: 64, 128>}, {pipeline_mode = #tpu.pipeline_mode<synchronous>, transform_indices = @transform_6, window_bounds = array<i64: 2, 128>}]} {
    %c0 = arith.constant 0 : index
    %c0_0 = arith.constant 0 : index
    %0 = vector.load %arg1[%c0, %c0_0] : memref<64x128xbf16, #tpu.memory_space<vmem>>, vector<64x128xbf16>
    %1 = arith.extf %0 : vector<64x128xbf16> to vector<64x128xf32>
    %c0_1 = arith.constant 0 : index
    %c0_2 = arith.constant 0 : index
    %2 = vector.load %arg2[%c0_1, %c0_2] : memref<1x128xf32, #tpu.memory_space<vmem>>, vector<1x128xf32>
    %3 = vector.broadcast %2 : vector<1x128xf32> to vector<64x128xf32>
    %4 = arith.mulf %1, %3 : vector<64x128xf32>
    %c0_3 = arith.constant 0 : index
    %c0_4 = arith.constant 0 : index
    %5 = vector.load %arg3[%c0_3, %c0_4] : memref<1x128xf32, #tpu.memory_space<vmem>>, vector<1x128xf32>
    %6 = vector.broadcast %5 : vector<1x128xf32> to vector<64x128xf32>
    %7 = arith.addf %4, %6 : vector<64x128xf32>
    %cst = arith.constant 0.000000e+00 : f32
    %8 = vector.broadcast %cst : f32 to vector<64x128xf32>
    %9 = arith.maximumf %7, %8 : vector<64x128xf32>
    %c0_5 = arith.constant 0 : index
    %c0_6 = arith.constant 0 : index
    %10 = vector.load %arg6[%c0_5, %c0_6] : memref<64x128xf32, #tpu.memory_space<vmem>>, vector<64x128xf32>
    tpu.vector_store %arg6[%c0_5, %c0_6], %9 {strides = array<i32>} : memref<64x128xf32, #tpu.memory_space<vmem>>, vector<64x128xf32>,
    %11 = vector.shape_cast %9 : vector<64x128xf32> to vector<1x64x128xf32>
    %cst_7 = arith.constant dense<0.000000e+00> : vector<1x128xf32>
    %12 = vector.multi_reduction <add>, %11, %cst_7 [1] : vector<1x64x128xf32> to vector<1x128xf32>
    %cst_8 = arith.constant 1.562500e-02 : f32
    %13 = vector.broadcast %cst_8 : f32 to vector<1x128xf32>
    %14 = arith.mulf %12, %13 : vector<1x128xf32>
    %15 = arith.index_cast %arg0 : i32 to index
    %c0_9 = arith.constant 0 : index
    %c0_10 = arith.constant 0 : index
    %16 = vector.load %arg8[%15, %c0_9, %c0_10] : memref<2x1x128xf32, #tpu.memory_space<vmem>>, vector<1x1x128xf32>
    %17 = vector.shape_cast %16 : vector<1x1x128xf32> to vector<1x128xf32>
    %18 = vector.shape_cast %14 : vector<1x128xf32> to vector<1x1x128xf32>
    tpu.vector_store %arg8[%15, %c0_9, %c0_10], %18 {strides = array<i32>} : memref<2x1x128xf32, #tpu.memory_space<vmem>>, vector<1x1x128xf32>,
    %c1_i32 = arith.constant 1 : i32
    %19 = arith.cmpi eq, %arg0, %c1_i32 : i32
    %20 = arith.extui %19 : i1 to i32
    %c0_i32 = arith.constant 0 : i32
    %21 = arith.cmpi ne, %20, %c0_i32 : i32
    scf.if %21 {
      %c0_11 = arith.constant 0 : index
      %c0_12 = arith.constant 0 : index
      %c0_13 = arith.constant 0 : index
      %22 = vector.load %arg8[%c0_11, %c0_12, %c0_13] : memref<2x1x128xf32, #tpu.memory_space<vmem>>, vector<2x1x128xf32>
      %23 = vector.shape_cast %22 : vector<2x1x128xf32> to vector<2x128xf32>
      %c0_14 = arith.constant 0 : index
      %c0_15 = arith.constant 0 : index
      %24 = vector.load %arg4[%c0_14, %c0_15] : memref<128x128xf32, #tpu.memory_space<vmem>>, vector<128x128xf32>
      %cst_16 = arith.constant dense<0.000000e+00> : vector<2x128xf32>
      %25 = tpu.matmul %23, %24, %cst_16 {dimension_numbers = #tpu.dot_dimension_numbers<[1], [0], [0], [1], [0, 0, 1, 1], [], []>} : vector<2x128xf32>, vector<128x128xf32>, vector<2x128xf32> -> vector<2x128xf32>
      %c0_17 = arith.constant 0 : index
      %c0_18 = arith.constant 0 : index
      %26 = vector.load %arg5[%c0_17, %c0_18] : memref<1x128xf32, #tpu.memory_space<vmem>>, vector<1x128xf32>
      %27 = vector.broadcast %26 : vector<1x128xf32> to vector<2x128xf32>
      %28 = arith.addf %25, %27 : vector<2x128xf32>
      %c0_19 = arith.constant 0 : index
      %c0_20 = arith.constant 0 : index
      %29 = vector.load %arg7[%c0_19, %c0_20] : memref<2x128xf32, #tpu.memory_space<vmem>>, vector<2x128xf32>
      tpu.vector_store %arg7[%c0_19, %c0_20], %28 {strides = array<i32>} : memref<2x128xf32, #tpu.memory_space<vmem>>, vector<2x128xf32>,
    } else {
    }
    return
  }
  func.func @transform_0(%arg0: i32) -> (i32, i32) {
    %c0_i32 = arith.constant 0 : i32
    %c0_i32_0 = arith.constant 0 : i32
    return %arg0, %c0_i32 : i32, i32
  }
  func.func @transform_1(%arg0: i32) -> (i32, i32) {
    %c0_i32 = arith.constant 0 : i32
    %c0_i32_0 = arith.constant 0 : i32
    %c0_i32_1 = arith.constant 0 : i32
    return %c0_i32, %c0_i32_0 : i32, i32
  }
  func.func @transform_2(%arg0: i32) -> (i32, i32) {
    %c0_i32 = arith.constant 0 : i32
    %c0_i32_0 = arith.constant 0 : i32
    %c0_i32_1 = arith.constant 0 : i32
    return %c0_i32, %c0_i32_0 : i32, i32
  }
  func.func @transform_3(%arg0: i32) -> (i32, i32) {
    %c0_i32 = arith.constant 0 : i32
    %c0_i32_0 = arith.constant 0 : i32
    %c0_i32_1 = arith.constant 0 : i32
    return %c0_i32, %c0_i32_0 : i32, i32
  }
  func.func @transform_4(%arg0: i32) -> (i32, i32) {
    %c0_i32 = arith.constant 0 : i32
    %c0_i32_0 = arith.constant 0 : i32
    %c0_i32_1 = arith.constant 0 : i32
    return %c0_i32, %c0_i32_0 : i32, i32
  }
  func.func @transform_5(%arg0: i32) -> (i32, i32) {
    %c0_i32 = arith.constant 0 : i32
    %c0_i32_0 = arith.constant 0 : i32
    return %arg0, %c0_i32 : i32, i32
  }
  func.func @transform_6(%arg0: i32) -> (i32, i32) {
    %c0_i32 = arith.constant 0 : i32
    %c0_i32_0 = arith.constant 0 : i32
    %c0_i32_1 = arith.constant 0 : i32
    return %c0_i32, %c0_i32_0 : i32, i32
  }
}

</mosaic_0001>

<bundles_post_ra>
// kernel: simkd_forward.4
= control target key start
LH: loop header
LB: loop body
LE: loop exit
PB: predicated region body
PF: predicated region fallthrough
CT: control target
= control target key end

     0   :  { %s816_s12 = smov 0   ;;  %s818_s13 = smov 0   ;;  %s884_s0 = inlined_call_operand.vmem [shape: bf16[128,128], index: 0, kind: input, shape index: {}]   ;;  %s885_s1 = inlined_call_operand.vmem [shape: bf16[128,128], index: 1, kind: input, shape index: {}]   ;;  %s886_s2 = inlined_call_operand.vmem [shape: bf16[128,128], index: 2, kind: output, shape index: {0}]   ;;  %s887_s3 = inlined_call_operand.vmem [shape: f32[2,2,128], index: 3, kind: output, shape index: {1}]  }
   0x1   :  { %s820_s14 = smov 0  }
   0x2 LB: > { %s33_s15 = sadd.s32 1, %s790_s13  ;;  %p633_p0 = scmp.ge.s32.totalorder %s794_s14, 1  ;;  %s794_s14 = sphi %s820_s14, %s14_s14   ;;  %s790_s13 = sphi %s818_s13, %s889_s13   ;;  %s786_s12 = sphi %s816_s12, %s888_s12  }
   0x3   : > { %p35_p1 = scmp.ge.s32.totalorder %s33_s15, 2  ;;  %p185_p2 = scmp.lt.s32.totalorder %s794_s14, 3 }
   0x5   : > { %s891_s15 = smov (%p35_p1, %s33_s15), 0  ;;  %p186_p3 = pnand %p633_p0, %p185_p2 }
   0x6   : > { %s634_s24 = sshll.u32 (!%p186_p3), %s786_s12, 3  ;;  %p257_p5 = scmp.lt.s32.totalorder (!%p186_p3), %s786_s12, 1 }
   0x7   : > { %189 = sbr.rel (%p186_p3) target bundleno = 207 (0xcf), region = 28  ;;  %p231_p4 = scmp.lt.s32.totalorder (!%p186_p3), %s634_s24, 15 }
   0xc   : > { %v700_v0 = vld [vmem:[%s885_s1 + $0x38] sm:$0xff]  ;;  %v699_v1 = vld [vmem:[%s885_s1 + $0x30] sm:$0xff]  ;;  %v698_v2 = vld [vmem:[%s885_s1 + $0x28] sm:$0xff]  ;;  %s893_s24 = smov (!%p231_p4, %s634_s24), 15  ;;  %s895_s12 = smov (!%p257_p5, %s786_s12), 1 }
   0xd   : > { %380 = vmatpush.bf16.msra.mxu0 %v700_v0  ;;  %724 = vmatpush.bf16.msra.mxu1 %v700_v0  ;;  %v697_v3 = vld [vmem:[%s885_s1 + $0x20] sm:$0xff]  ;;  %v696_v4 = vld [vmem:[%s885_s1 + $0x18] sm:$0xff]  ;;  %v695_v5 = vld [vmem:[%s885_s1 + $0x10] sm:$0xff]  ;;  %s635_s4 = sshll.u32 %s893_s24, 2  ;;  %s638_s17 = sshll.u32 %s895_s12, 1 }
   0xe   : > { %725 = vmatpush.bf16.msra.mxu2 %v700_v0  ;;  %726 = vmatpush.bf16.msra.mxu3 %v700_v0  ;;  %v694_v6 = vld [vmem:[%s885_s1 + $0x8] sm:$0xff]  ;;  %v693_v7 = vld [vmem:[%s885_s1] sm:$0xff]  ;;  %s237_s9 = scalar_lea.vmem %s884_s0, %s635_s4  ;;  %s255_s16 = scalar_lea.vmem %s886_s2, %s635_s4 }
   0xf   : > { %v689_v8 = vld [vmem:[%s237_s9] sm:$0xff]  ;;  %v690_v9 = vld [vmem:[%s237_s9 + $0x8] sm:$0xff]  ;;  %v691_v10 = vld [vmem:[%s237_s9 + $0x10] sm:$0xff]  ;;  %s263_s20 = scalar_lea.vmem %s887_s3, %s638_s17 }
  0x10   : > { %v692_v11 = vld [vmem:[%s237_s9 + $0x18] sm:$0xff] }
  0x11   : > { %381 = vmatpush.bf16.msra.mxu0 %v699_v1  ;;  %727 = vmatpush.bf16.msra.mxu1 %v699_v1 }
  0x12   : > { %728 = vmatpush.bf16.msra.mxu2 %v699_v1  ;;  %729 = vmatpush.bf16.msra.mxu3 %v699_v1 }
  0x15   : > { %382 = vmatpush.bf16.msra.mxu0 %v698_v2  ;;  %730 = vmatpush.bf16.msra.mxu1 %v698_v2 }
  0x16   : > { %731 = vmatpush.bf16.msra.mxu2 %v698_v2  ;;  %732 = vmatpush.bf16.msra.mxu3 %v698_v2 }
  0x19   : > { %383 = vmatpush.bf16.msra.mxu0 %v697_v3  ;;  %733 = vmatpush.bf16.msra.mxu1 %v697_v3 }
  0x1a   : > { %734 = vmatpush.bf16.msra.mxu2 %v697_v3  ;;  %735 = vmatpush.bf16.msra.mxu3 %v697_v3 }
  0x1d   : > { %384 = vmatpush.bf16.msra.mxu0 %v696_v4  ;;  %736 = vmatpush.bf16.msra.mxu1 %v696_v4 }
  0x1e   : > { %737 = vmatpush.bf16.msra.mxu2 %v696_v4  ;;  %738 = vmatpush.bf16.msra.mxu3 %v696_v4 }
  0x21   : > { %385 = vmatpush.bf16.msra.mxu0 %v695_v5  ;;  %739 = vmatpush.bf16.msra.mxu1 %v695_v5 }
  0x22   : > { %740 = vmatpush.bf16.msra.mxu2 %v695_v5  ;;  %741 = vmatpush.bf16.msra.mxu3 %v695_v5 }
  0x25   : > { %386 = vmatpush.bf16.msra.mxu0 %v694_v6  ;;  %742 = vmatpush.bf16.msra.mxu1 %v694_v6 }
  0x26   : > { %743 = vmatpush.bf16.msra.mxu2 %v694_v6  ;;  %744 = vmatpush.bf16.msra.mxu3 %v694_v6 }
  0x29   : > { %387 = vmatpush.bf16.msra.mxu0 %v693_v7  ;;  %745 = vmatpush.bf16.msra.mxu1 %v693_v7 }
  0x2a   : > { %746 = vmatpush.bf16.msra.mxu2 %v693_v7  ;;  %747 = vmatpush.bf16.msra.mxu3 %v693_v7 }
  0x2c   : > { %388 = vmatmul.bf16.vlgmr.msra.gmra.mxu0 %v689_v8  ;;  %393 = vmatmul.bf16.vlgmr.msra.gmra.mxu1 %v690_v9 }
  0x2d   : > { %398 = vmatmul.bf16.vlgmr.msra.gmra.mxu2 %v691_v10  ;;  %403 = vmatmul.bf16.vlgmr.msra.gmra.mxu3 %v692_v11 }
  0xa9   : > { %v389_v12 = vpop.f32.mrf.mxu0  ;;  %v394_v13 = vpop.f32.mrf.mxu1 }
  0xaa   : > { %v466_v16 = vmul.f32 %v389_v12, %v389_v12  ;;  %v468_v23 = vmul.f32 %v394_v13, %v394_v13 }
  0xb0   : > { %v399_v14 = vpop.f32.mrf.mxu2  ;;  %v404_v15 = vpop.f32.mrf.mxu3 }
  0xb1   : > { %v391_v17 = vpop.f32.mrf.mxu0  ;;  %v396_v18 = vpop.f32.mrf.mxu1  ;;  %v470_v29 = vmul.f32 %v399_v14, %v399_v14  ;;  %v472_v39 = vmul.f32 %v404_v15, %v404_v15 }
  0xb2   : > { %v704_v19 = vpack.c.bf16 %v391_v17, %v389_v12  ;;  %v452_v20 = vadd.f32 %v391_v17, %v389_v12  ;;  %v467_v21 = vmul.f32 %v391_v17, %v391_v17  ;;  %v709_v22 = vpack.c.bf16 %v396_v18, %v394_v13 }
  0xb3   : > { %v469_v27 = vmul.f32 %v396_v18, %v396_v18 }
  0xb4   : > { %705 = vst [vmem:[%s255_s16] sm:$0xff] %v704_v19   ;;  %v474_v24 = vadd.f32 %v467_v21, %v466_v16  ;;  %v453_v25 = vadd.f32 %v452_v20, %v394_v13 }
  0xb5   : > { %721 = vst [vmem:[%s255_s16 + $0x8] sm:$0xff] %v709_v22  }
  0xb6   : > { %v454_v26 = vadd.f32 %v453_v25, %v396_v18  ;;  %v475_v28 = vadd.f32 %v474_v24, %v468_v23 }
  0xb8   : > { %v476_v30 = vadd.f32 %v475_v28, %v469_v27  ;;  %v401_v31 = vpop.f32.mrf.mxu2  ;;  %v455_v32 = vadd.f32 %v454_v26, %v399_v14  ;;  %v406_v33 = vpop.f32.mrf.mxu3 }
  0xb9   : > { %v714_v34 = vpack.c.bf16 %v401_v31, %v399_v14  ;;  %v719_v35 = vpack.c.bf16 %v406_v33, %v404_v15  ;;  %v471_v37 = vmul.f32 %v401_v31, %v401_v31  ;;  %v473_v43 = vmul.f32 %v406_v33, %v406_v33 }
  0xba   : > { %v456_v36 = vadd.f32 %v455_v32, %v401_v31  ;;  %v477_v38 = vadd.f32 %v476_v30, %v470_v29 }
  0xbb   : > { %722 = vst [vmem:[%s255_s16 + $0x10] sm:$0xff] %v714_v34  }
  0xbc   : > { %v478_v40 = vadd.f32 %v477_v38, %v471_v37  ;;  %723 = vst [vmem:[%s255_s16 + $0x18] sm:$0xff] %v719_v35   ;;  %v457_v41 = vadd.f32 %v456_v36, %v404_v15 }
  0xbe   : > { %v458_v42 = vadd.f32 %v457_v41, %v406_v33  ;;  %v479_v44 = vadd.f32 %v478_v40, %v472_v39 }
  0xc0   : > { %v459_v45 = vrot.slane %v458_v42, 4  ;;  %v480_v46 = vadd.f32 %v479_v44, %v473_v43 }
  0xc2   : > { %v460_v47 = vadd.f32 %v459_v45, %v458_v42  ;;  %v481_v48 = vrot.slane %v480_v46, 4 }
  0xc4   : > { %v461_v49 = vrot.slane %v460_v47, 2  ;;  %v482_v50 = vadd.f32 %v481_v48, %v480_v46 }
  0xc6   : > { %v462_v51 = vadd.f32 %v461_v49, %v460_v47  ;;  %v483_v52 = vrot.slane %v482_v50, 2 }
  0xc8   : > { %v463_v53 = vrot.slane %v462_v51, 1  ;;  %v484_v54 = vadd.f32 %v483_v52, %v482_v50 }
  0xca   : > { %v464_v55 = vadd.f32 %v463_v53, %v462_v51  ;;  %v485_v56 = vrot.slane %v484_v54, 1 }
  0xcc   : > { %465 = vst [vmem:[%s263_s20] sm:$0x1] %v464_v55  ;;  %v486_v57 = vadd.f32 %v485_v56, %v484_v54 }
  0xce   : > { %487 = vst [vmem:[%s263_s20 + $0x1] sm:$0x1] %v486_v57 }
  0xcf PF: > { %s14_s14 = sadd.s32 1, %s794_s14   ;;  %s888_s12 = smov %s790_s13 }
  0xd0   : > { %p11_p6 = scmp.ge.s32.totalorder %s14_s14, 4   ;;  %s889_s13 = smov %s891_s15 }
  0xd2   :  { %13 = sbr.rel (!%p11_p6) target bundleno = 2 (0x2), region = 81 }

// kernel: simkd_forward.6
= control target key start
LH: loop header
LB: loop body
LE: loop exit
PB: predicated region body
PF: predicated region fallthrough
CT: control target
= control target key end

     0   :  { %s955_s18 = smov 0   ;;  %s957_s19 = smov 0   ;;  %s1033_s0 = inlined_call_operand.vmem [shape: bf16[128,128], index: 0, kind: input, shape index: {}]   ;;  %s1034_s1 = inlined_call_operand.vmem [shape: f32[1,128], index: 1, kind: input, shape index: {}]   ;;  %s1035_s2 = inlined_call_operand.vmem [shape: f32[1,128], index: 2, kind: input, shape index: {}]   ;;  %s1036_s3 = inlined_call_operand.vmem [shape: bf16[128,128], index: 3, kind: input, shape index: {}]   ;;  %s1037_s4 = inlined_call_operand.vmem [shape: bf16[128,128], index: 4, kind: output, shape index: {0}]   ;;  %s1038_s5 = inlined_call_operand.vmem [shape: f32[2,2,128], index: 5, kind: output, shape index: {1}]  }
   0x1   :  { %s959_s20 = smov 0  }
   0x2 LB: > { %s35_s21 = sadd.s32 1, %s919_s19  ;;  %p761_p0 = scmp.ge.s32.totalorder %s923_s20, 1  ;;  %s923_s20 = sphi %s959_s20, %s16_s20   ;;  %s919_s19 = sphi %s957_s19, %s1040_s19   ;;  %s915_s18 = sphi %s955_s18, %s1039_s18  }
   0x3   : > { %p37_p1 = scmp.ge.s32.totalorder %s35_s21, 2  ;;  %p251_p2 = scmp.lt.s32.totalorder %s923_s20, 3 }
   0x5   : > { %s1042_s21 = smov (%p37_p1, %s35_s21), 0  ;;  %p252_p3 = pnand %p761_p0, %p251_p2 }
   0x6   : > { %s762_s24 = sshll.u32 (!%p252_p3), %s915_s18, 3  ;;  %p339_p5 = scmp.lt.s32.totalorder (!%p252_p3), %s915_s18, 1 }
   0x7   : > { %255 = sbr.rel (%p252_p3) target bundleno = 207 (0xcf), region = 36  ;;  %p307_p4 = scmp.lt.s32.totalorder (!%p252_p3), %s762_s24, 15 }
   0xc   : > { %v808_v0 = vld [vmem:[%s1036_s3 + $0x38] sm:$0xff]  ;;  %v807_v1 = vld [vmem:[%s1036_s3 + $0x30] sm:$0xff]  ;;  %s1044_s24 = smov (!%p307_p4, %s762_s24), 15  ;;  %v806_v2 = vld [vmem:[%s1036_s3 + $0x28] sm:$0xff]  ;;  %s1046_s18 = smov (!%p339_p5, %s915_s18), 1 }
   0xd   : > { %482 = vmatpush.bf16.msra.mxu0 %v808_v0  ;;  %851 = vmatpush.bf16.msra.mxu1 %v808_v0  ;;  %s763_s27 = sshll.u32 %s1044_s24, 2  ;;  %v805_v4 = vld [vmem:[%s1036_s3 + $0x20] sm:$0xff]  ;;  %v804_v14 = vld [vmem:[%s1036_s3 + $0x18] sm:$0xff]  ;;  %v803_v24 = vld [vmem:[%s1036_s3 + $0x10] sm:$0xff]  ;;  %s766_s24 = sshll.u32 %s1046_s18, 1 }
   0xe   : > { %852 = vmatpush.bf16.msra.mxu2 %v808_v0  ;;  %853 = vmatpush.bf16.msra.mxu3 %v808_v0  ;;  %s313_s7 = scalar_lea.vmem %s1033_s0, %s763_s27  ;;  %v899_v9 = vld [vmem:[%s1034_s1] ss:$0 sm:$0xff]  ;;  %v802_v33 = vld [vmem:[%s1036_s3 + $0x8] sm:$0xff]  ;;  %s337_s30 = scalar_lea.vmem %s1037_s4, %s763_s27 }
   0xf   : > { %v810_v3 = vld [vmem:[%s313_s7] sm:$0xff]   ;;  %v845_v5 = vld [vmem:[%s313_s7 + $0x8] sm:$0xff]   ;;  %v846_v6 = vld [vmem:[%s313_s7 + $0x10] sm:$0xff]  }
  0x10   : > { %v847_v7 = vld [vmem:[%s313_s7 + $0x18] sm:$0xff]   ;;  %v811_v8 = vunpack.c.l.bf16 %v810_v3  ;;  %v812_v10 = vunpack.c.h.bf16 %v810_v3  ;;  %v815_v11 = vunpack.c.l.bf16 %v845_v5  ;;  %v816_v12 = vunpack.c.h.bf16 %v845_v5  ;;  %v900_v19 = vld [vmem:[%s1035_s2] ss:$0 sm:$0xff]  ;;  %s345_s7 = scalar_lea.vmem %s1038_s5, %s766_s24 }
  0x11   : > { %483 = vmatpush.bf16.msra.mxu0 %v807_v1  ;;  %854 = vmatpush.bf16.msra.mxu1 %v807_v1  ;;  %v819_v13 = vunpack.c.l.bf16 %v846_v6  ;;  %v820_v15 = vunpack.c.h.bf16 %v846_v6  ;;  %v823_v16 = vunpack.c.l.bf16 %v847_v7  ;;  %v824_v17 = vunpack.c.h.bf16 %v847_v7  ;;  %v801_v41 = vld [vmem:[%s1036_s3] sm:$0xff] }
  0x12   : > { %855 = vmatpush.bf16.msra.mxu2 %v807_v1  ;;  %856 = vmatpush.bf16.msra.mxu3 %v807_v1  ;;  %v378_v18 = vmul.f32 %v899_v9, %v811_v8  ;;  %v379_v20 = vmul.f32 %v899_v9, %v812_v10  ;;  %v380_v21 = vmul.f32 %v899_v9, %v815_v11 }
  0x13   : > { %v381_v22 = vmul.f32 %v899_v9, %v816_v12  ;;  %v382_v23 = vmul.f32 %v899_v9, %v819_v13  ;;  %v383_v25 = vmul.f32 %v899_v9, %v820_v15  ;;  %v384_v26 = vmul.f32 %v899_v9, %v823_v16 }
  0x14   : > { %v385_v27 = vmul.f32 %v899_v9, %v824_v17  ;;  %v390_v28 = vadd.f32 %v900_v19, %v378_v18  ;;  %v391_v29 = vadd.f32 %v900_v19, %v379_v20  ;;  %v392_v30 = vadd.f32 %v900_v19, %v380_v21 }
  0x15   : > { %484 = vmatpush.bf16.msra.mxu0 %v806_v2  ;;  %857 = vmatpush.bf16.msra.mxu1 %v806_v2  ;;  %v393_v31 = vadd.f32 %v900_v19, %v381_v22  ;;  %v394_v32 = vadd.f32 %v900_v19, %v382_v23  ;;  %v395_v34 = vadd.f32 %v900_v19, %v383_v25 }
  0x16   : > { %858 = vmatpush.bf16.msra.mxu2 %v806_v2  ;;  %859 = vmatpush.bf16.msra.mxu3 %v806_v2  ;;  %v396_v35 = vadd.f32 %v900_v19, %v384_v26  ;;  %v397_v36 = vadd.f32 %v900_v19, %v385_v27  ;;  %v398_v37 = vmax.f32 %v390_v28, 0.0  ;;  %v399_v38 = vmax.f32 %v391_v29, 0.0 }
  0x17   : > { %v400_v39 = vmax.f32 %v392_v30, 0.0  ;;  %v401_v40 = vmax.f32 %v393_v31, 0.0  ;;  %v402_v42 = vmax.f32 %v394_v32, 0.0  ;;  %v403_v43 = vmax.f32 %v395_v34, 0.0 }
  0x18   : > { %v404_v44 = vmax.f32 %v396_v35, 0.0  ;;  %v405_v45 = vmax.f32 %v397_v36, 0.0  ;;  %v406_v46 = vpack.c.bf16 %v399_v38, %v398_v37 }
  0x19   : > { %485 = vmatpush.bf16.msra.mxu0 %v805_v4  ;;  %860 = vmatpush.bf16.msra.mxu1 %v805_v4  ;;  %v407_v47 = vpack.c.bf16 %v401_v40, %v400_v39  ;;  %v408_v48 = vpack.c.bf16 %v403_v43, %v402_v42 }
  0x1a   : > { %861 = vmatpush.bf16.msra.mxu2 %v805_v4  ;;  %862 = vmatpush.bf16.msra.mxu3 %v805_v4  ;;  %v409_v49 = vpack.c.bf16 %v405_v45, %v404_v44 }
  0x1d   : > { %486 = vmatpush.bf16.msra.mxu0 %v804_v14  ;;  %863 = vmatpush.bf16.msra.mxu1 %v804_v14 }
  0x1e   : > { %864 = vmatpush.bf16.msra.mxu2 %v804_v14  ;;  %865 = vmatpush.bf16.msra.mxu3 %v804_v14 }
  0x21   : > { %487 = vmatpush.bf16.msra.mxu0 %v803_v24  ;;  %866 = vmatpush.bf16.msra.mxu1 %v803_v24 }
  0x22   : > { %867 = vmatpush.bf16.msra.mxu2 %v803_v24  ;;  %868 = vmatpush.bf16.msra.mxu3 %v803_v24 }
  0x25   : > { %488 = vmatpush.bf16.msra.mxu0 %v802_v33  ;;  %869 = vmatpush.bf16.msra.mxu1 %v802_v33 }
  0x26   : > { %870 = vmatpush.bf16.msra.mxu2 %v802_v33  ;;  %871 = vmatpush.bf16.msra.mxu3 %v802_v33 }
  0x29   : > { %489 = vmatpush.bf16.msra.mxu0 %v801_v41  ;;  %872 = vmatpush.bf16.msra.mxu1 %v801_v41 }
  0x2a   : > { %873 = vmatpush.bf16.msra.mxu2 %v801_v41  ;;  %874 = vmatpush.bf16.msra.mxu3 %v801_v41 }
  0x2c   : > { %490 = vmatmul.bf16.vlgmr.msra.gmra.mxu0 %v406_v46  ;;  %495 = vmatmul.bf16.vlgmr.msra.gmra.mxu1 %v407_v47 }
  0x2d   : > { %500 = vmatmul.bf16.vlgmr.msra.gmra.mxu2 %v408_v48  ;;  %505 = vmatmul.bf16.vlgmr.msra.gmra.mxu3 %v409_v49 }
  0xa9   : > { %v491_v50 = vpop.f32.mrf.mxu0  ;;  %v496_v51 = vpop.f32.mrf.mxu1 }
  0xaa   : > { %v568_v54 = vmul.f32 %v491_v50, %v491_v50  ;;  %v570_v61 = vmul.f32 %v496_v51, %v496_v51 }
  0xb0   : > { %v501_v52 = vpop.f32.mrf.mxu2  ;;  %v506_v53 = vpop.f32.mrf.mxu3 }
  0xb1   : > { %v493_v55 = vpop.f32.mrf.mxu0  ;;  %v498_v56 = vpop.f32.mrf.mxu1  ;;  %v572_v3 = vmul.f32 %v501_v52, %v501_v52  ;;  %v574_v13 = vmul.f32 %v506_v53, %v506_v53 }
  0xb2   : > { %v828_v57 = vpack.c.bf16 %v493_v55, %v491_v50  ;;  %v554_v58 = vadd.f32 %v493_v55, %v491_v50  ;;  %v569_v59 = vmul.f32 %v493_v55, %v493_v55  ;;  %v833_v60 = vpack.c.bf16 %v498_v56, %v496_v51 }
  0xb3   : > { %v571_v1 = vmul.f32 %v498_v56, %v498_v56 }
  0xb4   : > { %829 = vst [vmem:[%s337_s30] sm:$0xff] %v828_v57   ;;  %v576_v62 = vadd.f32 %v569_v59, %v568_v54  ;;  %v555_v63 = vadd.f32 %v554_v58, %v496_v51 }
  0xb5   : > { %848 = vst [vmem:[%s337_s30 + $0x8] sm:$0xff] %v833_v60  }
  0xb6   : > { %v556_v0 = vadd.f32 %v555_v63, %v498_v56  ;;  %v577_v2 = vadd.f32 %v576_v62, %v570_v61 }
  0xb8   : > { %v578_v4 = vadd.f32 %v577_v2, %v571_v1  ;;  %v503_v5 = vpop.f32.mrf.mxu2  ;;  %v557_v6 = vadd.f32 %v556_v0, %v501_v52  ;;  %v508_v7 = vpop.f32.mrf.mxu3 }
  0xb9   : > { %v838_v8 = vpack.c.bf16 %v503_v5, %v501_v52  ;;  %v843_v9 = vpack.c.bf16 %v508_v7, %v506_v53  ;;  %v573_v11 = vmul.f32 %v503_v5, %v503_v5  ;;  %v575_v17 = vmul.f32 %v508_v7, %v508_v7 }
  0xba   : > { %v558_v10 = vadd.f32 %v557_v6, %v503_v5  ;;  %v579_v12 = vadd.f32 %v578_v4, %v572_v3 }
  0xbb   : > { %849 = vst [vmem:[%s337_s30 + $0x10] sm:$0xff] %v838_v8  }
  0xbc   : > { %v580_v14 = vadd.f32 %v579_v12, %v573_v11  ;;  %850 = vst [vmem:[%s337_s30 + $0x18] sm:$0xff] %v843_v9   ;;  %v559_v15 = vadd.f32 %v558_v10, %v506_v53 }
  0xbe   : > { %v560_v16 = vadd.f32 %v559_v15, %v508_v7  ;;  %v581_v18 = vadd.f32 %v580_v14, %v574_v13 }
  0xc0   : > { %v561_v19 = vrot.slane %v560_v16, 4  ;;  %v582_v20 = vadd.f32 %v581_v18, %v575_v17 }
  0xc2   : > { %v562_v21 = vadd.f32 %v561_v19, %v560_v16  ;;  %v583_v22 = vrot.slane %v582_v20, 4 }
  0xc4   : > { %v563_v23 = vrot.slane %v562_v21, 2  ;;  %v584_v24 = vadd.f32 %v583_v22, %v582_v20 }
  0xc6   : > { %v564_v25 = vadd.f32 %v563_v23, %v562_v21  ;;  %v585_v26 = vrot.slane %v584_v24, 2 }
  0xc8   : > { %v565_v27 = vrot.slane %v564_v25, 1  ;;  %v586_v28 = vadd.f32 %v585_v26, %v584_v24 }
  0xca   : > { %v566_v29 = vadd.f32 %v565_v27, %v564_v25  ;;  %v587_v30 = vrot.slane %v586_v28, 1 }
  0xcc   : > { %567 = vst [vmem:[%s345_s7] sm:$0x1] %v566_v29  ;;  %v588_v31 = vadd.f32 %v587_v30, %v586_v28 }
  0xce   : > { %589 = vst [vmem:[%s345_s7 + $0x1] sm:$0x1] %v588_v31 }
  0xcf PF: > { %s16_s20 = sadd.s32 1, %s923_s20   ;;  %s1039_s18 = smov %s919_s19 }
  0xd0   : > { %p13_p6 = scmp.ge.s32.totalorder %s16_s20, 4   ;;  %s1040_s19 = smov %s1042_s21 }
  0xd2   :  { %15 = sbr.rel (!%p13_p6) target bundleno = 2 (0x2), region = 95 }

// kernel: simkd_forward.5
= control target key start
LH: loop header
LB: loop body
LE: loop exit
PB: predicated region body
PF: predicated region fallthrough
CT: control target
= control target key end

     0   :  { %s2769_s21 = smov 0   ;;  %s2771_s22 = smov 0   ;;  %s3464_s0 = inlined_call_operand.vmem [shape: bf16[2,10,10,128], index: 0, kind: input, shape index: {}]   ;;  %s3465_s1 = inlined_call_operand.vmem [shape: f32[1,10,10,128], index: 1, kind: input, shape index: {}]   ;;  %s3466_s2 = inlined_call_operand.vmem [shape: f32[1,128], index: 2, kind: input, shape index: {}]   ;;  %s3467_s3 = inlined_call_operand.vmem [shape: f32[1,128], index: 3, kind: input, shape index: {}]   ;;  %s3468_s4 = inlined_call_operand.vmem [shape: bf16[3,3,128,128], index: 4, kind: input, shape index: {}]   ;;  %s3469_s5 = inlined_call_operand.vmem [shape: bf16[128,128], index: 5, kind: output, shape index: {0}]   ;;  %s3470_s6 = inlined_call_operand.vmem [shape: f32[2,2,128], index: 6, kind: output, shape index: {1}]  }
   0x1   :  { %s2773_s23 = smov 0  }
   0x2 LB: > { %s36_s24 = sadd.s32 1, %s2728_s22  ;;  %p2139_p0 = scmp.ge.s32.totalorder %s2732_s23, 1  ;;  %s2732_s23 = sphi %s2773_s23, %s17_s23   ;;  %s2728_s22 = sphi %s2771_s22, %s3476_s22   ;;  %s2724_s21 = sphi %s2769_s21, %s3475_s21  }
   0x3   : > { %p38_p1 = scmp.ge.s32.totalorder %s36_s24, 2  ;;  %p275_p2 = scmp.lt.s32.totalorder %s2732_s23, 3 }
   0x5   : > { %s3478_s24 = smov (%p38_p1, %s36_s24), 0  ;;  %p276_p3 = pnand %p2139_p0, %p275_p2 }
   0x6   : > { %p332_p4 = scmp.lt.s32.totalorder (!%p276_p3), %s2724_s21, 1 }
   0x7   : > { %279 = sbr.rel (%p276_p3) target bundleno = 347 (0x15b), region = 40 }
   0xc   : > { %v2579_v0 = vld [vmem:[%s3468_s4 + $0x38] sm:$0xff]  ;;  %v2578_v2 = vld [vmem:[%s3468_s4 + $0x30] sm:$0xff]  ;;  %s2800_s7 = scalar_select %p332_p4, %s2724_s21, 1  ;;  %v2577_v6 = vld [vmem:[%s3468_s4 + $0x28] sm:$0xff]  ;;  %vm949_vm0 = vcmask 1042432   ;;  %vm950_vm1 = vcmask 1046532  }
   0xd   : > { %v2595_v1 = vld [vmem:[%s3468_s4 + $0xb8] sm:$0xff]  ;;  %2667 = vmatpush.bf16.msra.mxu1 %v2579_v0  ;;  %647 = vmatpush.bf16.msra.mxu0 %v2579_v0  ;;  %v2594_v3 = vld [vmem:[%s3468_s4 + $0xb0] sm:$0xff]  ;;  %v2823_v7 = vld [vmem:[%s3466_s2] ss:$0 sm:$0xff]  ;;  %vm692_vm3 = vsmask.f32 3328 }
   0xe   : > { %1073 = vmatpush.bf16.msra.mxu2 %v2595_v1  ;;  %v2603_v4 = vld [vmem:[%s3468_s4 + $0xf8] sm:$0xff]  ;;  %s2683_s12 = smul.u32 80, %s2800_s7  ;;  %v2602_v5 = vld [vmem:[%s3468_s4 + $0xf0] sm:$0xff]  ;;  %v2593_v8 = vld [vmem:[%s3468_s4 + $0xa8] sm:$0xff]  ;;  %vm693_vm4 = vsmask.f32 7440 }
   0xf   : > { %1201 = vmatpush.bf16.msra.mxu3 %v2603_v4  ;;  %v2833_v13 = vld [vmem:[%s3467_s3] ss:$0 sm:$0xff]  ;;  %v2601_v14 = vld [vmem:[%s3468_s4 + $0xe8] sm:$0xff]  ;;  %v501_v28 = vld [vmem:[%s3465_s1 + $0x50] sm:$0xff]  ;;  %s2143_s16 = sshll.u32 %s2800_s7, 1 }
  0x10   : > { %s2818_s19 = scalar_lea.vmem %s3464_s0, %s2683_s12  ;;  %v2576_v15 = vld [vmem:[%s3468_s4 + $0x20] sm:$0xff]  ;;  %v2575_v34 = vld [vmem:[%s3468_s4 + $0x18] sm:$0xff]  ;;  %v493_v46 = vld [vmem:[%s3465_s1 + $0x10] sm:$0xff]  ;;  %s370_s20 = scalar_lea.vmem %s3470_s6, %s2143_s16 }
  0x11   : > { %2668 = vmatpush.bf16.msra.mxu1 %v2578_v2  ;;  %648 = vmatpush.bf16.msra.mxu0 %v2578_v2  ;;  %v393_v9 = vld [vmem:[%s2818_s19 + $0x20] sm:$0xf]  ;;  %v395_v10 = vld [vmem:[%s2818_s19 + $0x28] sm:$0xf]  ;;  %v386_v25 = vld [vmem:[%s2818_s19 + $0x4] sm:$0x1] }
  0x12   : > { %1074 = vmatpush.bf16.msra.mxu2 %v2594_v3  ;;  %v413_v11 = vunpack.c.l.bf16 %v393_v9  ;;  %v415_v12 = vunpack.c.l.bf16 %v395_v10  ;;  %v385_v18 = vld [vmem:[%s2818_s19] sm:$0xf]  ;;  %v387_v19 = vld [vmem:[%s2818_s19 + $0x8] sm:$0xf]  ;;  %v388_v26 = vld [vmem:[%s2818_s19 + $0xc] sm:$0x1]  ;;  %v406_v32 = vunpack.c.l.bf16 %v386_v25 }
  0x13   : > { %1202 = vmatpush.bf16.msra.mxu3 %v2602_v5  ;;  %v2592_v20 = vld [vmem:[%s3468_s4 + $0xa0] sm:$0xff]  ;;  %v405_v21 = vunpack.c.l.bf16 %v385_v18  ;;  %v407_v22 = vunpack.c.l.bf16 %v387_v19  ;;  %v408_v33 = vunpack.c.l.bf16 %v388_v26  ;;  %v2591_v37 = vld [vmem:[%s3468_s4 + $0x98] sm:$0xff]  ;;  %v397_v42 = vld [vmem:[%s2818_s19 + $0x30] sm:$0xf] }
  0x14   : > { %v436_v16 = vmul.f32 %v2823_v7, %v413_v11  ;;  %v438_v17 = vmul.f32 %v2823_v7, %v415_v12  ;;  %v499_v27 = vld [vmem:[%s3465_s1 + $0x40] sm:$0xff]  ;;  %v429_v40 = vmul.f32 %v2823_v7, %v406_v32  ;;  %v399_v47 = vld [vmem:[%s2818_s19 + $0x38] sm:$0xf]  ;;  %v417_v48 = vunpack.c.l.bf16 %v397_v42  ;;  %v2574_v54 = vld [vmem:[%s3468_s4 + $0x10] sm:$0xff] }
  0x15   : > { %2669 = vmatpush.bf16.msra.mxu1 %v2577_v6  ;;  %649 = vmatpush.bf16.msra.mxu0 %v2577_v6  ;;  %v2600_v29 = vld [vmem:[%s3468_s4 + $0xe0] sm:$0xff]  ;;  %v428_v30 = vmul.f32 %v2823_v7, %v405_v21  ;;  %v430_v31 = vmul.f32 %v2823_v7, %v407_v22  ;;  %v431_v41 = vmul.f32 %v2823_v7, %v408_v33  ;;  %v2599_v51 = vld [vmem:[%s3468_s4 + $0xd8] sm:$0xff]  ;;  %v492_v57 = vld [vmem:[%s3465_s1 + $0x8] sm:$0x3]  ;;  %v419_v59 = vunpack.c.l.bf16 %v399_v47 }
  0x16   : > { %1075 = vmatpush.bf16.msra.mxu2 %v2593_v8  ;;  %v459_v23 = vadd.f32 %v2833_v13, %v436_v16  ;;  %v461_v24 = vadd.f32 %v2833_v13, %v438_v17  ;;  %v491_v45 = vld [vmem:[%s3465_s1] sm:$0xff]  ;;  %v452_v52 = vadd.f32 %v2833_v13, %v429_v40  ;;  %v494_v58 = vld [vmem:[%s3465_s1 + $0x18] sm:$0x3]  ;;  %v440_v60 = vmul.f32 %v2823_v7, %v417_v48  ;;  %v2590_v61 = vld [vmem:[%s3468_s4 + $0x90] sm:$0xff] }
  0x17   : > { %1203 = vmatpush.bf16.msra.mxu3 %v2601_v14  ;;  %v451_v38 = vadd.f32 %v2833_v13, %v428_v30  ;;  %v453_v39 = vadd.f32 %v2833_v13, %v430_v31  ;;  %v454_v53 = vadd.f32 %v2833_v13, %v431_v41  ;;  %v389_v2 = vld [vmem:[%s2818_s19 + $0x10] sm:$0xf]  ;;  %v442_v3 = vmul.f32 %v2823_v7, %v419_v59  ;;  %v2573_v10 = vld [vmem:[%s3468_s4 + $0x8] sm:$0xff]  ;;  %v390_v21 = vld [vmem:[%s2818_s19 + $0x14] sm:$0x1] }
  0x18   : > { %v479_v35 = vmax.f32 %v459_v23, 0.0  ;;  %v481_v36 = vmax.f32 %v461_v24, 0.0  ;;  %v472_v0 = vmax.f32 %v452_v52, 0.0  ;;  %v2598_v9 = vld [vmem:[%s3468_s4 + $0xd0] sm:$0xff]  ;;  %v463_v14 = vadd.f32 %v2833_v13, %v440_v60  ;;  %v2589_v17 = vld [vmem:[%s3468_s4 + $0x88] sm:$0xff]  ;;  %vm2932_vm2 = vmor %vm949_vm0, %vm950_vm1 }
  0x19   : > { %2670 = vmatpush.bf16.msra.mxu1 %v2576_v15  ;;  %650 = vmatpush.bf16.msra.mxu0 %v2576_v15  ;;  %v471_v49 = vmax.f32 %v451_v38, 0.0  ;;  %v473_v50 = vmax.f32 %v453_v39, 0.0  ;;  %v474_v1 = vmax.f32 %v454_v53, 0.0  ;;  %v391_v15 = vld [vmem:[%s2818_s19 + $0x18] sm:$0xf]  ;;  %v409_v16 = vunpack.c.l.bf16 %v389_v2  ;;  %v2597_v30 = vld [vmem:[%s3468_s4 + $0xc8] sm:$0xff]  ;;  %vm3108_vm5 = vmor %vm692_vm3, %vm693_vm4 }
  0x1a   : > { %1076 = vmatpush.bf16.msra.mxu2 %v2592_v20  ;;  %v519_v43 = vmul.f32 %v499_v27, %v479_v35  ;;  %v521_v44 = vmul.f32 %v501_v28, %v481_v36  ;;  %v512_v6 = vmul.f32 %v492_v57, %v472_v0  ;;  %v465_v20 = vadd.f32 %v2833_v13, %v442_v3  ;;  %v392_v27 = vld [vmem:[%s2818_s19 + $0x1c] sm:$0x1]  ;;  %v2572_v32 = vld [vmem:[%s3468_s4] sm:$0xff]  ;;  %v496_v3 = vld [vmem:[%s3465_s1 + $0x28] sm:$0x3] }
  0x1b   : > { %1204 = vmatpush.bf16.msra.mxu3 %v2600_v29  ;;  %v511_v62 = vmul.f32 %v491_v45, %v471_v49  ;;  %v513_v63 = vmul.f32 %v493_v46, %v473_v50  ;;  %v514_v8 = vmul.f32 %v494_v58, %v474_v1  ;;  %v411_v31 = vunpack.c.l.bf16 %v391_v15  ;;  %v2588_v38 = vld [vmem:[%s3468_s4 + $0x80] sm:$0xff]  ;;  %v2611_v45 = vld [vmem:[%s3468_s4 + $0x138] sm:$0xff]  ;;  %v505_v50 = vld [vmem:[%s3465_s1 + $0x70] sm:$0xff] }
  0x1c   : > { %v2889_v55 = vpack.c.bf16 %v519_v43, %v519_v43  ;;  %v2891_v56 = vpack.c.bf16 %v521_v44, %v521_v44  ;;  %v2922_v18 = vpack.c.bf16 %v512_v6, %v512_v6  ;;  %v432_v35 = vmul.f32 %v2823_v7, %v409_v16  ;;  %v503_v41 = vld [vmem:[%s3465_s1 + $0x60] sm:$0xff]  ;;  %v2627_v49 = vld [vmem:[%s3468_s4 + $0x1b8] sm:$0xff]  ;;  %v2610_v6 = vld [vmem:[%s3468_s4 + $0x130] sm:$0xff] }
  0x1d   : > { %2671 = vmatpush.bf16.msra.mxu1 %v2575_v34  ;;  %651 = vmatpush.bf16.msra.mxu0 %v2575_v34  ;;  %v2905_v4 = vpack.c.bf16 %v511_v62, %v511_v62  ;;  %v2907_v5 = vpack.c.bf16 %v513_v63, %v513_v63  ;;  %v2924_v19 = vpack.c.bf16 %v514_v8, %v514_v8  ;;  %v483_v34 = vmax.f32 %v463_v14, 0.0  ;;  %v2596_v59 = vld [vmem:[%s3468_s4 + $0xc0] sm:$0xff]  ;;  %v2586_v62 = vld [vmem:[%s3468_s4 + $0x70] sm:$0xff] }
  0x1e   : > { %1077 = vmatpush.bf16.msra.mxu2 %v2591_v37  ;;  %v587_v11 = vunpack.c.l.b16 %v2889_v55  ;;  %v588_v12 = vunpack.c.l.b16 %v2891_v56  ;;  %v954_v28 = vrot.slane %v2922_v18, 5  ;;  %v410_v36 = vunpack.c.l.bf16 %v390_v21  ;;  %v2587_v37 = vld [vmem:[%s3468_s4 + $0x78] sm:$0xff]  ;;  %v495_v60 = vld [vmem:[%s3465_s1 + $0x20] sm:$0xff] }
  0x1f   : > { %1205 = vmatpush.bf16.msra.mxu3 %v2599_v51  ;;  %v583_v22 = vunpack.c.l.b16 %v2905_v4  ;;  %v584_v23 = vunpack.c.l.b16 %v2907_v5  ;;  %v2224_v25 = vrot.slane %v2905_v4, 9  ;;  %v2225_v26 = vrot.slane %v2907_v5, 9 }
  0x20   : > { %v958_v29 = vrot.slane %v2924_v19, 5  ;;  %v2951_v33 = vpack.c.b16 %v588_v12, %v587_v11  ;;  %v434_v42 = vmul.f32 %v2823_v7, %v411_v31  ;;  %v412_v43 = vunpack.c.l.bf16 %v392_v27  ;;  %v2609_v31 = vld [vmem:[%s3468_s4 + $0x128] sm:$0xff] }
  0x21   : > { %2672 = vmatpush.bf16.msra.mxu1 %v2574_v54  ;;  %652 = vmatpush.bf16.msra.mxu0 %v2574_v54  ;;  %v955_v39 = vsel %vm2932_vm2, %v2224_v25, %v954_v28  ;;  %v591_v44 = vpack.c.b16 %v584_v23, %v583_v22  ;;  %v485_v48 = vmax.f32 %v465_v20, 0.0  ;;  %v455_v51 = vadd.f32 %v2833_v13, %v432_v35  ;;  %v2635_v22 = vld [vmem:[%s3468_s4 + $0x1f8] sm:$0xff] }
  0x22   : > { %1078 = vmatpush.bf16.msra.mxu2 %v2590_v61  ;;  %v2964_v40 = vsel %vm2932_vm2, %v2225_v26, %v958_v29  ;;  %v1009_v46 = vunpack.c.l.b16 %v955_v39  ;;  %v457_v52 = vadd.f32 %v2833_v13, %v434_v42  ;;  %v433_v53 = vmul.f32 %v2823_v7, %v410_v36  ;;  %v497_v61 = vld [vmem:[%s3465_s1 + $0x30] sm:$0xff]  ;;  %v2584_v42 = vld [vmem:[%s3468_s4 + $0x60] sm:$0xff] }
  0x23   : > { %1206 = vmatpush.bf16.msra.mxu3 %v2598_v9  ;;  %v1010_v47 = vunpack.c.l.b16 %v2964_v40  ;;  %v435_v54 = vmul.f32 %v2823_v7, %v412_v43  ;;  %v523_v58 = vmul.f32 %v503_v41, %v483_v34  ;;  %v475_v63 = vmax.f32 %v455_v51, 0.0  ;;  %v498_v9 = vld [vmem:[%s3465_s1 + $0x38] sm:$0x3] }
  0x24   : > { %v477_v0 = vmax.f32 %v457_v52, 0.0  ;;  %v456_v1 = vadd.f32 %v2833_v13, %v433_v53  ;;  %v525_v8 = vmul.f32 %v505_v50, %v485_v48  ;;  %v696_v14 = vshrl.u32 %v2905_v4, 16  ;;  %v2634_v48 = vld [vmem:[%s3468_s4 + $0x1f0] sm:$0xff] }
  0x25   : > { %2673 = vmatpush.bf16.msra.mxu1 %v2573_v10  ;;  %653 = vmatpush.bf16.msra.mxu0 %v2573_v10  ;;  %v1017_v57 = vpack.c.b16 %v1010_v47, %v1009_v46  ;;  %v458_v2 = vadd.f32 %v2833_v13, %v435_v54  ;;  %v2626_v10 = vld [vmem:[%s3468_s4 + $0x1b0] sm:$0xff]  ;;  %v699_v15 = vshll.u32 %v2905_v4, 16  ;;  %v515_v16 = vmul.f32 %v495_v60, %v475_v63  ;;  %v2585_v4 = vld [vmem:[%s3468_s4 + $0x68] sm:$0xff]  ;;  %v394_v54 = vld [vmem:[%s2818_s19 + $0x24] sm:$0x1] }
  0x26   : > { %1079 = vmatpush.bf16.msra.mxu2 %v2589_v17  ;;  %v517_v17 = vmul.f32 %v497_v61, %v477_v0  ;;  %v476_v20 = vmax.f32 %v456_v1, 0.0  ;;  %v3020_v25 = vpack.c.bf16 %v523_v58, %v523_v58  ;;  %v710_v26 = vshrl.u32 %v2907_v5, 16  ;;  %v396_v60 = vld [vmem:[%s2818_s19 + $0x2c] sm:$0x1] }
  0x27   : > { %1207 = vmatpush.bf16.msra.mxu3 %v2597_v30  ;;  %v478_v21 = vmax.f32 %v458_v2, 0.0  ;;  %v535_v27 = vpack.c.bf16 %v515_v16, %v515_v16  ;;  %v698_v34 = vrot.slane %v696_v14, 4  ;;  %v701_v35 = vrot.slane %v699_v15, 5  ;;  %v2607_v15 = vld [vmem:[%s3468_s4 + $0x118] sm:$0xff] }
  0x28   : > { %v3026_v28 = vpack.c.bf16 %v517_v17, %v517_v17  ;;  %v516_v29 = vmul.f32 %v496_v3, %v476_v20  ;;  %v713_v36 = vshll.u32 %v2907_v5, 16  ;;  %v589_v43 = vunpack.c.l.b16 %v3020_v25  ;;  %v2624_v5 = vld [vmem:[%s3468_s4 + $0x1a0] sm:$0xff]  ;;  %v2633_v3 = vld [vmem:[%s3468_s4 + $0x1e8] sm:$0xff] }
  0x29   : > { %2674 = vmatpush.bf16.msra.mxu1 %v2572_v32  ;;  %654 = vmatpush.bf16.msra.mxu0 %v2572_v32  ;;  %v518_v30 = vmul.f32 %v498_v9, %v478_v21  ;;  %v3031_v32 = vpack.c.bf16 %v525_v8, %v525_v8  ;;  %v712_v46 = vrot.slane %v710_v26, 4  ;;  %v702_v58 = vor.u32 %v701_v35, %v698_v34 }
  0x2a   : > { %1080 = vmatpush.bf16.msra.mxu2 %v2588_v38  ;;  %v585_v38 = vunpack.c.l.b16 %v535_v27  ;;  %v3037_v39 = vpack.c.bf16 %v516_v29, %v516_v29  ;;  %v715_v53 = vrot.slane %v713_v36, 5  ;;  %v724_v63 = vshrl.u32 %v535_v27, 16 }
  0x2b   : > { %1208 = vmatpush.bf16.msra.mxu3 %v2596_v59  ;;  %v3039_v41 = vpack.c.bf16 %v518_v30, %v518_v30  ;;  %v705_v59 = vshll.u32 %v2922_v18, 16  ;;  %v719_v1 = vshll.u32 %v2924_v19, 16  ;;  %v727_v2 = vshll.u32 %v535_v27, 16  ;;  %v2606_v30 = vld [vmem:[%s3468_s4 + $0x110] sm:$0xff] }
  0x2c   : > { %665 = vmatmul.bf16.vlgmr.msra.gmra.mxu1 %v2951_v33  ;;  %655 = vmatmul.bf16.vlgmr.msra.gmra.mxu0 %v591_v44  ;;  %v2226_v44 = vrot.slane %v535_v27, 9  ;;  %v1145_v50 = vpack.c.b16 %v585_v38, %v584_v23  ;;  %v962_v51 = vrot.slane %v3037_v39, 5  ;;  %v586_v23 = vunpack.c.l.b16 %v3026_v28 }
  0x2d   : > { %896 = vmatpush.bf16.msrb.mxu1 %v2587_v37  ;;  %1342 = vmatpush.bf16.msrb.mxu0 %v2611_v45  ;;  %v2625_v37 = vld [vmem:[%s3468_s4 + $0x1a8] sm:$0xff]  ;;  %v2227_v45 = vrot.slane %v3026_v28, 9  ;;  %v966_v52 = vrot.slane %v3039_v41, 5  ;;  %v716_v8 = vor.u32 %v715_v53, %v712_v46  ;;  %v726_v9 = vrot.slane %v724_v63, 4  ;;  %v2623_v46 = vld [vmem:[%s3468_s4 + $0x198] sm:$0xff]  ;;  %v2632_v53 = vld [vmem:[%s3468_s4 + $0x1e0] sm:$0xff] }
  0x2e   : > { %1596 = vmatpush.bf16.msrb.mxu2 %v2627_v49  ;;  %v2608_v49 = vld [vmem:[%s3468_s4 + $0x120] sm:$0xff]  ;;  %1209 = vmatmul.bf16.vlgmr.msra.gmra.mxu3 %v1145_v50  ;;  %v963_v61 = vsel %vm2932_vm2, %v2226_v44, %v962_v51  ;;  %v416_v14 = vunpack.c.l.bf16 %v396_v60  ;;  %v729_v17 = vrot.slane %v727_v2, 5  ;;  %v3091_v20 = vpack.c.b16 %v586_v23, %v585_v38  ;;  %v500_v38 = vld [vmem:[%s3465_s1 + $0x48] sm:$0x3]  ;;  %v2631_v2 = vld [vmem:[%s3468_s4 + $0x1d8] sm:$0xff] }
  0x2f   : > { %1081 = vmatmul.bf16.vlgmr.msra.gmra.mxu2 %v1017_v57  ;;  %1731 = vmatpush.bf16.msrb.mxu3 %v2635_v22  ;;  %v590_v57 = vunpack.c.l.b16 %v3031_v32  ;;  %v1011_v0 = vunpack.c.l.b16 %v963_v61  ;;  %v707_v21 = vrot.slane %v705_v59, 5  ;;  %v703_v27 = vrot.slane %v702_v58, 4 }
  0x30   : > { %v439_v26 = vmul.f32 %v2823_v7, %v416_v14  ;;  %v730_v29 = vor.u32 %v729_v17, %v726_v9  ;;  %v733_v40 = vshll.u32 %v3037_v39, 16  ;;  %v717_v34 = vrot.slane %v716_v8, 4  ;;  %v502_v39 = vld [vmem:[%s3465_s1 + $0x58] sm:$0x3]  ;;  %v2580_v17 = vld [vmem:[%s3468_s4 + $0x40] sm:$0xff] }
  0x31   : > { %897 = vmatpush.bf16.msrb.mxu1 %v2586_v62  ;;  %1343 = vmatpush.bf16.msrb.mxu0 %v2610_v6  ;;  %v3068_v62 = vsel %vm2932_vm2, %v2227_v45, %v966_v52  ;;  %v2583_v6 = vld [vmem:[%s3468_s4 + $0x58] sm:$0xff]  ;;  %v3082_v19 = vpack.c.b16 %v590_v57, %v589_v43  ;;  %v3089_v16 = vpack.c.b16 %v1011_v0, %v1010_v47  ;;  %v2582_v47 = vld [vmem:[%s3468_s4 + $0x50] sm:$0xff]  ;;  %v721_v35 = vrot.slane %v719_v1, 5 }
  0x32   : > { %1597 = vmatpush.bf16.msrb.mxu2 %v2626_v10  ;;  %v1012_v18 = vunpack.c.l.b16 %v3068_v62  ;;  %v414_v10 = vunpack.c.l.bf16 %v394_v54  ;;  %v1146_v50 = vpack.c.b16 %v587_v11, %v586_v23  ;;  %v731_v51 = vrot.slane %v730_v29, 4  ;;  %v2581_v54 = vld [vmem:[%s3468_s4 + $0x48] sm:$0xff]  ;;  %v2622_v11 = vld [vmem:[%s3468_s4 + $0x190] sm:$0xff]  ;;  %v2604_v29 = vld [vmem:[%s3468_s4 + $0x100] sm:$0xff] }
  0x33   : > { %1732 = vmatpush.bf16.msrb.mxu3 %v2634_v48  ;;  %v400_v48 = vld [vmem:[%s2818_s19 + $0x3c] sm:$0x1]  ;;  %v735_v52 = vrot.slane %v733_v40, 5  ;;  %v722_v58 = vsel %vm3108_vm5, %v717_v34, %v721_v35  ;;  %v2605_v23 = vld [vmem:[%s3468_s4 + $0x108] sm:$0xff]  ;;  %v738_v61 = vshrl.u32 %v3026_v28, 16  ;;  %v741_v63 = vshll.u32 %v3026_v28, 16 }
  0x34   : > { %v437_v22 = vmul.f32 %v2823_v7, %v414_v10  ;;  %v420_v1 = vunpack.c.l.bf16 %v400_v48  ;;  %v2229_v8 = vrot.slane %v2891_v56, 9  ;;  %v752_v9 = vshrl.u32 %v2889_v55, 16 }
  0x35   : > { %898 = vmatpush.bf16.msrb.mxu1 %v2585_v4  ;;  %1344 = vmatpush.bf16.msrb.mxu0 %v2609_v31  ;;  %v3097_v4 = vpack.c.b16 %v1012_v18, %v1011_v0  ;;  %v736_v10 = vsel %vm3108_vm5, %v731_v51, %v735_v52  ;;  %v755_v28 = vshll.u32 %v2889_v55, 16  ;;  %v740_v40 = vrot.slane %v738_v61, 4 }
  0x36   : > { %1598 = vmatpush.bf16.msrb.mxu2 %v2625_v37  ;;  %v460_v36 = vadd.f32 %v2833_v13, %v437_v22  ;;  %v462_v37 = vadd.f32 %v2833_v13, %v439_v26  ;;  %v833_v22 = vunpack.c.l.b16 %v722_v58  ;;  %v3176_v35 = vunpack.c.l.b16 %v736_v10 }
  0x37   : > { %1733 = vmatpush.bf16.msrb.mxu3 %v2633_v3 }
  0x38   : > { %v480_v44 = vmax.f32 %v460_v36, 0.0  ;;  %v482_v45 = vmax.f32 %v462_v37, 0.0 }
  0x39   : > { %899 = vmatpush.bf16.msrb.mxu1 %v2584_v42  ;;  %1345 = vmatpush.bf16.msrb.mxu0 %v2608_v49  ;;  %v398_v42 = vld [vmem:[%s2818_s19 + $0x34] sm:$0x1]  ;;  %v708_v49 = vsel %vm3108_vm5, %v703_v27, %v707_v21 }
  0x3a   : > { %1599 = vmatpush.bf16.msrb.mxu2 %v2624_v5  ;;  %v520_v59 = vmul.f32 %v500_v38, %v480_v44  ;;  %v522_v60 = vmul.f32 %v502_v39, %v482_v45  ;;  %v2228_v5 = vrot.slane %v2889_v55, 9  ;;  %v418_v0 = vunpack.c.l.bf16 %v398_v42  ;;  %v2619_v55 = vld [vmem:[%s3468_s4 + $0x178] sm:$0xff]  ;;  %v504_v42 = vld [vmem:[%s3465_s1 + $0x68] sm:$0x3] }
  0x3b   : > { %1734 = vmatpush.bf16.msrb.mxu3 %v2632_v53  ;;  %v832_v21 = vunpack.c.l.b16 %v708_v49  ;;  %v3189_v38 = vld [vmem:[%s3468_s4 + $0x238] sm:$0xff]  ;;  %v754_v39 = vrot.slane %v752_v9, 4  ;;  %v2618_v53 = vld [vmem:[%s3468_s4 + $0x170] sm:$0xff] }
  0x3c   : > { %670 = vmatmul.bf16.gmra.mxu1 %v3082_v19  ;;  %660 = vmatmul.bf16.gmra.mxu0 %v3091_v20  ;;  %v3152_v3 = vpack.c.bf16 %v520_v59, %v520_v59  ;;  %v441_v14 = vmul.f32 %v2823_v7, %v418_v0  ;;  %v506_v49 = vld [vmem:[%s3465_s1 + $0x78] sm:$0x3]  ;;  %v1286_v59 = vpack.c.b16 %v3176_v35, %v833_v22 }
  0x3d   : > { %900 = vmatpush.bf16.msrb.mxu1 %v2583_v6  ;;  %1346 = vmatpush.bf16.msrb.mxu0 %v2607_v15  ;;  %v3154_v6 = vpack.c.bf16 %v522_v60, %v522_v60  ;;  %v443_v15 = vmul.f32 %v2823_v7, %v420_v1  ;;  %v840_v52 = vpack.c.b16 %v833_v22, %v832_v21  ;;  %v3236_v21 = vld [vmem:[%s3468_s4 + $0x228] sm:$0xff]  ;;  %v2630_v22 = vld [vmem:[%s3468_s4 + $0x1d0] sm:$0xff] }
  0x3e   : > { %1600 = vmatpush.bf16.msrb.mxu2 %v2623_v46  ;;  %v970_v26 = vrot.slane %v3152_v3, 5  ;;  %1214 = vmatmul.bf16.gmra.mxu3 %v1146_v50  ;;  %v757_v46 = vrot.slane %v755_v28, 5  ;;  %v401_v50 = vld [vmem:[%s2818_s19 + $0x40] sm:$0xf] }
  0x3f   : > { %1086 = vmatmul.bf16.gmra.mxu2 %v3097_v4  ;;  %v974_v27 = vrot.slane %v3154_v6, 5  ;;  %v466_v34 = vadd.f32 %v2833_v13, %v443_v15  ;;  %1735 = vmatpush.bf16.msrb.mxu3 %v2631_v2 }
  0x40   : > { %v3180_v36 = vsel %vm2932_vm2, %v2228_v5, %v970_v26  ;;  %v758_v61 = vor.u32 %v757_v46, %v754_v39  ;;  %v2629_v39 = vld [vmem:[%s3468_s4 + $0x1c8] sm:$0xff]  ;;  %v769_v46 = vshll.u32 %v2891_v56, 16 }
  0x41   : > { %901 = vmatpush.bf16.msrb.mxu1 %v2582_v47  ;;  %1347 = vmatpush.bf16.msrb.mxu0 %v2606_v30  ;;  %v743_v47 = vrot.slane %v741_v63, 5  ;;  %v464_v30 = vadd.f32 %v2833_v13, %v441_v14  ;;  %v3184_v37 = vsel %vm2932_vm2, %v2229_v8, %v974_v27  ;;  %v1013_v44 = vunpack.c.l.b16 %v3180_v36  ;;  %v2617_v8 = vld [vmem:[%s3468_s4 + $0x168] sm:$0xff] }
  0x42   : > { %1601 = vmatpush.bf16.msrb.mxu2 %v2622_v11  ;;  %v1014_v45 = vunpack.c.l.b16 %v3184_v37  ;;  %v486_v51 = vmax.f32 %v466_v34, 0.0  ;;  %v421_v11 = vunpack.c.l.bf16 %v401_v50  ;;  %v761_v63 = vshll.u32 %v3152_v3, 16  ;;  %v2621_v3 = vld [vmem:[%s3468_s4 + $0x188] sm:$0xff] }
  0x43   : > { %v484_v48 = vmax.f32 %v464_v30, 0.0  ;;  %v744_v60 = vor.u32 %v743_v47, %v740_v40  ;;  %v759_v14 = vrot.slane %v758_v61, 4  ;;  %v2231_v27 = vrot.slane %v3031_v32, 9  ;;  %v402_v40 = vld [vmem:[%s2818_s19 + $0x44] sm:$0x1]  ;;  %1736 = vmatpush.bf16.msrb.mxu3 %v2630_v22 }
  0x44   : > { %v526_v5 = vmul.f32 %v506_v49, %v486_v51  ;;  %v444_v2 = vmul.f32 %v2823_v7, %v421_v11  ;;  %v763_v15 = vrot.slane %v761_v63, 5  ;;  %v1147_v47 = vpack.c.b16 %v589_v43, %v588_v12  ;;  %v2616_v30 = vld [vmem:[%s3468_s4 + $0x160] sm:$0xff] }
  0x45   : > { %902 = vmatpush.bf16.msrb.mxu1 %v2581_v54  ;;  %1348 = vmatpush.bf16.msrb.mxu0 %v2605_v23  ;;  %v747_v54 = vshll.u32 %v3039_v41, 16  ;;  %v524_v58 = vmul.f32 %v504_v42, %v484_v48  ;;  %v3210_v23 = vpack.c.b16 %v1014_v45, %v1013_v44  ;;  %v3216_v41 = vld [vmem:[%s3468_s4 + $0x230] sm:$0xff]  ;;  %v745_v9 = vrot.slane %v744_v60, 4  ;;  %v507_v43 = vld [vmem:[%s3465_s1 + $0x80] sm:$0xff] }
  0x46   : > { %v3220_v1 = vpack.c.bf16 %v526_v5, %v526_v5  ;;  %v467_v28 = vadd.f32 %v2833_v13, %v444_v2  ;;  %1602 = vmatpush.bf16.msrb.mxu2 %v2621_v3  ;;  %v766_v34 = vshrl.u32 %v2891_v56, 16  ;;  %v780_v49 = vshrl.u32 %v3020_v25, 16  ;;  %v3273_v51 = vld [vmem:[%s3468_s4 + $0x220] sm:$0xff] }
  0x47   : > { %v3218_v0 = vpack.c.bf16 %v524_v58, %v524_v58  ;;  %v749_v10 = vrot.slane %v747_v54, 5  ;;  %v764_v12 = vsel %vm3108_vm5, %v759_v14, %v763_v15  ;;  %v783_v50 = vshll.u32 %v3020_v25, 16  ;;  %1737 = vmatpush.bf16.msrb.mxu3 %v2629_v39  ;;  %v2612_v39 = vld [vmem:[%s3468_s4 + $0x140] sm:$0xff] }
  0x48   : > { %v487_v48 = vmax.f32 %v467_v28, 0.0  ;;  %v422_v56 = vunpack.c.l.bf16 %v402_v40  ;;  %v768_v58 = vrot.slane %v766_v34, 4  ;;  %v771_v60 = vrot.slane %v769_v46, 5  ;;  %v2638_v34 = vld [vmem:[%s3468_s4 + $0x210] sm:$0xff] }
  0x49   : > { %903 = vmatpush.bf16.msrb.mxu1 %v2580_v17  ;;  %1349 = vmatpush.bf16.msrb.mxu0 %v2604_v29  ;;  %v2230_v17 = vrot.slane %v3020_v25, 9  ;;  %v978_v26 = vrot.slane %v3218_v0, 5  ;;  %v2620_v29 = vld [vmem:[%s3468_s4 + $0x180] sm:$0xff]  ;;  %v750_v42 = vsel %vm3108_vm5, %v745_v9, %v749_v10  ;;  %v2615_v25 = vld [vmem:[%s3468_s4 + $0x158] sm:$0xff]  ;;  %v782_v11 = vrot.slane %v780_v49, 4  ;;  %v2614_v9 = vld [vmem:[%s3468_s4 + $0x150] sm:$0xff] }
  0x4a   : > { %1603 = vmatpush.bf16.msrb.mxu2 %v2620_v29  ;;  %v835_v54 = vunpack.c.l.b16 %v750_v42  ;;  %v527_v5 = vmul.f32 %v507_v43, %v487_v48  ;;  %v785_v2 = vrot.slane %v783_v50, 5  ;;  %v775_v28 = vshll.u32 %v3154_v6, 16 }
  0x4b   : > { %v794_v48 = vshrl.u32 %v3031_v32, 16  ;;  %v797_v49 = vshll.u32 %v3031_v32, 16 }
  0x4c   : > { %904 = vmatmul.bf16.vlgmr.msrb.gmra.mxu1 %v840_v52  ;;  %1350 = vmatmul.bf16.vlgmr.msrb.gmra.mxu0 %v1286_v59  ;;  %v3277_v52 = vsel %vm2932_vm2, %v2230_v17, %v978_v26  ;;  %v3286_v59 = vunpack.c.l.b16 %v764_v12  ;;  %v3294_v3 = vpack.c.b16 %v835_v54, %v3176_v35  ;;  %v3301_v14 = vpack.c.bf16 %v527_v5, %v527_v5 }
  0x4d   : > { %1474 = vmatpush.bf16.msra.mxu1 %v2619_v55  ;;  %1857 = vmatpush.bf16.msra.mxu0 %v3189_v38  ;;  %v982_v55 = vrot.slane %v3220_v1, 5  ;;  %v1015_v61 = vunpack.c.l.b16 %v3277_v52  ;;  %v786_v15 = vor.u32 %v785_v2, %v782_v11  ;;  %v789_v17 = vshll.u32 %v3218_v0, 16  ;;  %v2628_v0 = vld [vmem:[%s3468_s4 + $0x1c0] sm:$0xff] }
  0x4e   : > { %1219 = vmatmul.bf16.gmra.mxu3 %v1147_v47  ;;  %2675 = vmatpush.bf16.msra.mxu2 %v3189_v38  ;;  %v1287_v10 = vpack.c.b16 %v3286_v59, %v835_v54  ;;  %v772_v38 = vor.u32 %v771_v60, %v768_v58  ;;  %v777_v26 = vrot.slane %v775_v28, 5  ;;  %v1247_v50 = vshrl.u32 %v3301_v14, 16  ;;  %v2636_v28 = vld [vmem:[%s3468_s4 + $0x200] sm:$0xff] }
  0x4f   : > { %1091 = vmatmul.bf16.gmra.mxu2 %v3210_v23  ;;  %v787_v29 = vrot.slane %v786_v15, 4  ;;  %v791_v40 = vrot.slane %v789_v17, 5  ;;  %1738 = vmatpush.bf16.msrb.mxu3 %v2628_v0  ;;  %v796_v32 = vrot.slane %v794_v48, 4  ;;  %v799_v58 = vrot.slane %v797_v49, 5  ;;  %v404_v0 = vld [vmem:[%s2818_s19 + $0x4c] sm:$0x1] }
  0x50   : > { %v773_v6 = vrot.slane %v772_v38, 4  ;;  %v1249_v60 = vrot.slane %v1247_v50, 4 }
  0x51   : > { %1475 = vmatpush.bf16.msra.mxu1 %v2618_v53  ;;  %1858 = vmatpush.bf16.msra.mxu0 %v3216_v41  ;;  %v3281_v53 = vsel %vm2932_vm2, %v2231_v27, %v982_v55  ;;  %v1144_v27 = vunpack.c.l.b16 %v3301_v14  ;;  %v2639_v55 = vld [vmem:[%s3468_s4 + $0x218] sm:$0xff]  ;;  %v792_v12 = vsel %vm3108_vm5, %v787_v29, %v791_v40  ;;  %v424_v29 = vunpack.c.l.bf16 %v404_v0 }
  0x52   : > { %v1016_v63 = vunpack.c.l.b16 %v3281_v53  ;;  %2676 = vmatpush.bf16.msra.mxu2 %v3216_v41  ;;  %v2613_v41 = vld [vmem:[%s3468_s4 + $0x148] sm:$0xff]  ;;  %v778_v42 = vsel %vm3108_vm5, %v773_v6, %v777_v26  ;;  %v838_v54 = vunpack.c.l.b16 %v792_v12 }
  0x53   : > { %v1148_v46 = vpack.c.b16 %v1144_v27, %v590_v57  ;;  %v837_v57 = vunpack.c.l.b16 %v778_v42  ;;  %v403_v26 = vld [vmem:[%s2818_s19 + $0x48] sm:$0xf]  ;;  %v510_v42 = vld [vmem:[%s3465_s1 + $0x98] sm:$0x3]  ;;  %s2141_s19 = sshll.u32 %s2724_s21, 3 }
  0x54   : > { %v3308_v35 = vpack.c.b16 %v1016_v63, %v1015_v61  ;;  %p356_p5 = scmp.lt.s32.totalorder %s2141_s19, 15 }
  0x55   : > { %1476 = vmatpush.bf16.msra.mxu1 %v2617_v8  ;;  %1859 = vmatpush.bf16.msra.mxu0 %v3236_v21  ;;  %v445_v8 = vmul.f32 %v2823_v7, %v422_v56  ;;  %v2637_v56 = vld [vmem:[%s3468_s4 + $0x208] sm:$0xff]  ;;  %v842_v11 = vpack.c.b16 %v837_v57, %v3286_v59  ;;  %v1288_v2 = vpack.c.b16 %v838_v54, %v837_v57 }
  0x56   : > { %2677 = vmatpush.bf16.msra.mxu2 %v3236_v21  ;;  %v1250_v21 = vshll.u32 %v3301_v14, 16  ;;  %s3480_s19 = smov (!%p356_p5, %s2141_s19), 15 }
  0x57   : > { %v468_v22 = vadd.f32 %v2833_v13, %v445_v8  ;;  %v803_v8 = vshll.u32 %v3220_v1, 16  ;;  %v1419_v1 = vpack.c.b16 %v1013_v44, %v1012_v18  ;;  %s2142_s13 = sshll.u32 %s3480_s19, 2 }
  0x58   : > { %v1252_v5 = vrot.slane %v1250_v21, 5  ;;  %s3433_s15 = scalar_lea.vmem %s3469_s5, %s2142_s13 }
  0x59   : > { %1477 = vmatpush.bf16.msra.mxu1 %v2616_v30  ;;  %1860 = vmatpush.bf16.msra.mxu0 %v3273_v51  ;;  %v488_v47 = vmax.f32 %v468_v22, 0.0  ;;  %v508_v30 = vld [vmem:[%s3465_s1 + $0x88] sm:$0x3]  ;;  %v805_v38 = vrot.slane %v803_v8, 5 }
  0x5a   : > { %2678 = vmatpush.bf16.msra.mxu2 %v3273_v51 }
  0x5b   : > { %v528_v43 = vmul.f32 %v508_v30, %v488_v47  ;;  %v447_v47 = vmul.f32 %v2823_v7, %v424_v29 }
  0x5c   : > { %909 = vmatmul.bf16.gmra.mxu1 %v3294_v3  ;;  %1355 = vmatmul.bf16.gmra.mxu0 %v1287_v10  ;;  %v1253_v10 = vor.u32 %v1252_v5, %v1249_v60 }
  0x5d   : > { %1478 = vmatpush.bf16.msra.mxu1 %v2615_v25  ;;  %1861 = vmatpush.bf16.msra.mxu0 %v2639_v55  ;;  %v3350_v25 = vpack.c.bf16 %v528_v43, %v528_v43  ;;  %v470_v30 = vadd.f32 %v2833_v13, %v447_v47 }
  0x5e   : > { %1224 = vmatmul.bf16.gmra.mxu3 %v1148_v46  ;;  %2679 = vmatpush.bf16.msra.mxu2 %v2639_v55  ;;  %v1254_v59 = vrot.slane %v1253_v10, 4  ;;  %v423_v55 = vunpack.c.l.bf16 %v403_v26 }
  0x5f   : > { %1096 = vmatmul.bf16.gmra.mxu2 %v3308_v35  ;;  %v1256_v51 = vshll.u32 %v3350_v25, 16 }
  0x60   : > { %v446_v62 = vmul.f32 %v2823_v7, %v423_v55 }
  0x61   : > { %1479 = vmatpush.bf16.msra.mxu1 %v2614_v9  ;;  %1862 = vmatpush.bf16.msra.mxu0 %v2638_v34  ;;  %v800_v9 = vor.u32 %v799_v58, %v796_v32  ;;  %v1258_v17 = vrot.slane %v1256_v51, 5  ;;  %v2376_v58 = vrot.slane %v3301_v14, 9 }
  0x62   : > { %2680 = vmatpush.bf16.msra.mxu2 %v2638_v34  ;;  %v469_v44 = vadd.f32 %v2833_v13, %v446_v62 }
  0x63   : > { %v801_v15 = vrot.slane %v800_v9, 4  ;;  %v1259_v6 = vsel %vm3108_vm5, %v1254_v59, %v1258_v17 }
  0x64   : > { %v489_v40 = vmax.f32 %v469_v44, 0.0 }
  0x65   : > { %1480 = vmatpush.bf16.msra.mxu1 %v2613_v41  ;;  %1863 = vmatpush.bf16.msra.mxu0 %v2637_v56  ;;  %v806_v22 = vsel %vm3108_vm5, %v801_v15, %v805_v38  ;;  %v1285_v41 = vunpack.c.l.b16 %v1259_v6 }
  0x66   : > { %2681 = vmatpush.bf16.msra.mxu2 %v2637_v56 }
  0x69   : > { %1481 = vmatpush.bf16.msra.mxu1 %v2612_v39  ;;  %1864 = vmatpush.bf16.msra.mxu0 %v2636_v28  ;;  %v490_v39 = vmax.f32 %v470_v30, 0.0 }
  0x6a   : > { %2682 = vmatpush.bf16.msra.mxu2 %v2636_v28 }
  0x6b   : > { %v530_v48 = vmul.f32 %v510_v42, %v490_v39 }
  0x6c   : > { %914 = vmatmul.bf16.gmra.mxu1 %v842_v11  ;;  %1360 = vmatmul.bf16.gmra.mxu0 %v1288_v2 }
  0x6d   : > { %v550_v7 = vpack.c.bf16 %v530_v48, %v530_v48 }
  0x6e   : > { %1739 = vmatmul.bf16.vlgmr.msrb.gmra.mxu3 %v3294_v3  ;;  %v509_v3 = vld [vmem:[%s3465_s1 + $0x90] sm:$0xff] }
  0x6f   : > { %1604 = vmatmul.bf16.vlgmr.msrb.gmra.mxu2 %v3091_v20  ;;  %v839_v20 = vunpack.c.l.b16 %v806_v22  ;;  %v529_v34 = vmul.f32 %v509_v3, %v489_v40  ;;  %v1651_v50 = vshll.u32 %v550_v7, 16 }
  0x71   : > { %v843_v36 = vpack.c.b16 %v839_v20, %v838_v54  ;;  %v1289_v18 = vpack.c.b16 %v1285_v41, %v839_v20  ;;  %v549_v46 = vpack.c.bf16 %v529_v34, %v529_v34  ;;  %v1653_v57 = vrot.slane %v1651_v50, 5 }
  0x73   : > { %v1645_v49 = vshll.u32 %v549_v46, 16  ;;  %v1545_v21 = vunpack.c.l.b16 %v549_v46  ;;  %v2521_v60 = vrot.slane %v549_v46, 9 }
  0x75   : > { %v1647_v13 = vrot.slane %v1645_v49, 5  ;;  %v1546_v54 = vpack.c.b16 %v1545_v21, %v1144_v27 }
  0x7c   : > { %919 = vmatmul.bf16.gmra.mxu1 %v843_v36  ;;  %1365 = vmatmul.bf16.gmra.mxu0 %v1289_v18 }
  0x7e   : > { %1744 = vmatmul.bf16.gmra.mxu3 %v842_v11 }
  0x7f   : > { %1609 = vmatmul.bf16.gmra.mxu2 %v2951_v33  ;;  %v1642_v33 = vshrl.u32 %v549_v46, 16 }
  0x81   : > { %v1644_v12 = vrot.slane %v1642_v33, 4 }
  0x83   : > { %v1648_v43 = vor.u32 %v1647_v13, %v1644_v12 }
  0x85   : > { %v1649_v56 = vrot.slane %v1648_v43, 4 }
  0x87   : > { %v1654_v32 = vsel %vm3108_vm5, %v1649_v56, %v1653_v57 }
  0x8c   : > { %1482 = vmatmul.bf16.vlgmr.msra.gmra.mxu1 %v3089_v16  ;;  %1865 = vmatmul.bf16.vlgmr.msra.gmra.mxu0 %v3097_v4  ;;  %v1680_v16 = vunpack.c.l.b16 %v1654_v32  ;;  %v1779_v4 = vrot.slane %v550_v7, 5 }
  0x8e   : > { %1749 = vmatmul.bf16.gmra.mxu3 %v843_v36  ;;  %v1681_v5 = vpack.c.b16 %v1680_v16, %v1285_v41  ;;  %v1780_v27 = vsel %vm2932_vm2, %v2521_v60, %v1779_v4 }
  0x8f   : > { %1614 = vmatmul.bf16.gmra.mxu2 %v3082_v19  ;;  %v1390_v19 = vrot.slane %v3350_v25, 5  ;;  %v1806_v2 = vunpack.c.l.b16 %v1780_v27 }
  0x91   : > { %v1391_v11 = vsel %vm2932_vm2, %v2376_v58, %v1390_v19 }
  0x92   : > { %v1417_v31 = vunpack.c.l.b16 %v1391_v11 }
  0x94   : > { %v1807_v9 = vpack.c.b16 %v1806_v2, %v1417_v31  ;;  %v1421_v38 = vpack.c.b16 %v1417_v31, %v1016_v63 }
  0x9c   : > { %1487 = vmatmul.bf16.gmra.mxu1 %v1419_v1  ;;  %1870 = vmatmul.bf16.gmra.mxu0 %v3210_v23  ;;  %v1420_v23 = vpack.c.b16 %v1015_v61, %v1014_v45 }
  0x9e   : > { %1754 = vmatmul.bf16.gmra.mxu3 %v1681_v5 }
  0x9f   : > { %1619 = vmatmul.bf16.gmra.mxu2 %v1546_v54 }
  0xa9   : > { %v666_v25 = vpop.f32.mrf.mxu1  ;;  %v656_v8 = vpop.f32.mrf.mxu0 }
  0xac   : > { %1492 = vmatmul.bf16.gmra.mxu1 %v1420_v23  ;;  %1875 = vmatmul.bf16.gmra.mxu0 %v3308_v35 }
  0xaf   : > { %1880 = vmatmul.bf16.vlgmr.msra.gmra.mxu2 %v1807_v9 }
  0xb1   : > { %v668_v10 = vpop.f32.mrf.mxu1  ;;  %v658_v51 = vpop.f32.mrf.mxu0 }
  0xb2   : > { %v1082_v14 = vpop.f32.mrf.mxu2  ;;  %v1210_v24 = vpop.f32.mrf.mxu3 }
  0xb9   : > { %v671_v15 = vpop.f32.mrf.mxu1  ;;  %v661_v37 = vpop.f32.mrf.mxu0 }
  0xba   : > { %v1084_v28 = vpop.f32.mrf.mxu2  ;;  %v3402_v52 = vpop.f32.mrf.mxu3 }
  0xbc   : > { %1497 = vmatmul.bf16.gmra.mxu1 %v1421_v38 }
  0xc1   : > { %v673_v61 = vpop.f32.mrf.mxu1  ;;  %v663_v59 = vpop.f32.mrf.mxu0 }
  0xc2   : > { %v1087_v45 = vpop.f32.mrf.mxu2  ;;  %v1215_v17 = vpop.f32.mrf.mxu3 }
  0xc9   : > { %v905_v35 = vpop.f32.mrf.mxu1  ;;  %v1351_v22 = vpop.f32.mrf.mxu0 }
  0xca   : > { %v1089_v1 = vpop.f32.mrf.mxu2  ;;  %v925_v6 = vadd.f32 %v905_v35, %v656_v8  ;;  %v3404_v41 = vpop.f32.mrf.mxu3 }
  0xcc   : > { %v1102_v26 = vadd.f32 %v1082_v14, %v925_v6 }
  0xce   : > { %v1230_v20 = vadd.f32 %v1210_v24, %v1102_v26 }
  0xd0   : > { %v1371_v53 = vadd.f32 %v1351_v22, %v1230_v20 }
  0xd1   : > { %v907_v55 = vpop.f32.mrf.mxu1  ;;  %v1353_v62 = vpop.f32.mrf.mxu0 }
  0xd2   : > { %v1092_v63 = vpop.f32.mrf.mxu2  ;;  %v926_v36 = vadd.f32 %v907_v55, %v658_v51  ;;  %v1220_v44 = vpop.f32.mrf.mxu3 }
  0xd4   : > { %v1103_v18 = vadd.f32 %v1084_v28, %v926_v36 }
  0xd9   : > { %v910_v29 = vpop.f32.mrf.mxu1  ;;  %v1356_v40 = vpop.f32.mrf.mxu0 }
  0xda   : > { %v1094_v0 = vpop.f32.mrf.mxu2  ;;  %v927_v47 = vadd.f32 %v910_v29, %v661_v37  ;;  %v3406_v42 = vpop.f32.mrf.mxu3  ;;  %v1231_v37 = vadd.f32 %v3402_v52, %v1103_v18 }
  0xdc   : > { %v1104_v3 = vadd.f32 %v1087_v45, %v927_v47 }
  0xde   : > { %v1232_v30 = vadd.f32 %v1215_v17, %v1104_v3 }
  0xe0   : > { %v1373_v34 = vadd.f32 %v1356_v40, %v1232_v30 }
  0xe1   : > { %v912_v46 = vpop.f32.mrf.mxu1  ;;  %v3408_v48 = vpop.f32.mrf.mxu0 }
  0xe2   : > { %v1097_v39 = vpop.f32.mrf.mxu2  ;;  %v928_v33 = vadd.f32 %v912_v46, %v663_v59  ;;  %v3410_v50 = vpop.f32.mrf.mxu3 }
  0xe4   : > { %v1105_v49 = vadd.f32 %v1089_v1, %v928_v33 }
  0xe9   : > { %v915_v12 = vpop.f32.mrf.mxu1  ;;  %v1361_v13 = vpop.f32.mrf.mxu0 }
  0xea   : > { %v1099_v7 = vpop.f32.mrf.mxu2  ;;  %v929_v43 = vadd.f32 %v915_v12, %v666_v25  ;;  %v3418_v58 = vpop.f32.mrf.mxu3 }
  0xec   : > { %v1106_v21 = vadd.f32 %v1092_v63, %v929_v43 }
  0xee   : > { %v1234_v56 = vadd.f32 %v1220_v44, %v1106_v21 }
  0xf0   : > { %v3412_v57 = vadd.f32 %v1361_v13, %v1234_v56 }
  0xf1   : > { %v917_v32 = vpop.f32.mrf.mxu1  ;;  %v3414_v16 = vpop.f32.mrf.mxu0 }
  0xf2   : > { %v1605_v54 = vpop.f32.mrf.mxu2  ;;  %v930_v19 = vadd.f32 %v917_v32, %v668_v10  ;;  %v1740_v2 = vpop.f32.mrf.mxu3 }
  0xf4   : > { %v3416_v4 = vadd.f32 %v1094_v0, %v930_v19  ;;  %v1233_v0 = vadd.f32 %v3404_v41, %v1105_v49 }
  0xf9   : > { %v920_v5 = vpop.f32.mrf.mxu1  ;;  %v3420_v11 = vpop.f32.mrf.mxu0 }
  0xfa   : > { %v1607_v60 = vpop.f32.mrf.mxu2  ;;  %v931_v27 = vadd.f32 %v920_v5, %v671_v15  ;;  %v1742_v10 = vpop.f32.mrf.mxu3  ;;  %v1372_v15 = vadd.f32 %v1353_v62, %v1231_v37 }
  0xfc   : > { %v3422_v31 = vadd.f32 %v1097_v39, %v931_v27  ;;  %v1374_v39 = vadd.f32 %v3408_v48, %v1233_v0 }
 0x101   : > { %v922_v25 = vpop.f32.mrf.mxu1  ;;  %v3424_v8 = vpop.f32.mrf.mxu0 }
 0x102   : > { %v1610_v23 = vpop.f32.mrf.mxu2  ;;  %v932_v9 = vadd.f32 %v922_v25, %v673_v61  ;;  %v1745_v22 = vpop.f32.mrf.mxu3 }
 0x104   : > { %v3426_v14 = vadd.f32 %v1099_v7, %v932_v9 }
 0x109   : > { %v1483_v51 = vpop.f32.mrf.mxu1  ;;  %v1866_v24 = vpop.f32.mrf.mxu0 }
 0x10a   : > { %v1503_v38 = vadd.f32 %v1483_v51, %v1371_v53  ;;  %v1612_v28 = vpop.f32.mrf.mxu2  ;;  %v1747_v47 = vpop.f32.mrf.mxu3 }
 0x10c   : > { %v1625_v45 = vadd.f32 %v1605_v54, %v1503_v38 }
 0x10e   : > { %v1760_v59 = vadd.f32 %v1740_v2, %v1625_v45  ;;  %v1235_v2 = vadd.f32 %v3406_v42, %v3416_v4 }
 0x110   : > { %v1886_v6 = vadd.f32 %v1866_v24, %v1760_v59 }
 0x111   : > { %v1485_v17 = vpop.f32.mrf.mxu1  ;;  %v1868_v1 = vpop.f32.mrf.mxu0 }
 0x112   : > { %v1504_v35 = vadd.f32 %v1485_v17, %v1372_v15  ;;  %v1615_v26 = vpop.f32.mrf.mxu2  ;;  %v1943_v53 = vmul.f32 %v1886_v6, %v1886_v6  ;;  %v1750_v54 = vpop.f32.mrf.mxu3 }
 0x114   : > { %v1626_v61 = vadd.f32 %v1607_v60, %v1504_v35 }
 0x116   : > { %v1761_v20 = vadd.f32 %v1742_v10, %v1626_v61  ;;  %v1376_v10 = vadd.f32 %v3414_v16, %v1235_v2 }
 0x118   : > { %v1887_v63 = vadd.f32 %v1868_v1, %v1761_v20 }
 0x119   : > { %v1488_v52 = vpop.f32.mrf.mxu1  ;;  %v1871_v55 = vpop.f32.mrf.mxu0 }
 0x11a   : > { %v2647_v62 = vpack.c.bf16 %v1887_v63, %v1886_v6  ;;  %v1929_v36 = vadd.f32 %v1887_v63, %v1886_v6  ;;  %v1944_v18 = vmul.f32 %v1887_v63, %v1887_v63  ;;  %v1505_v44 = vadd.f32 %v1488_v52, %v1373_v34  ;;  %v1617_v30 = vpop.f32.mrf.mxu2  ;;  %v1752_v24 = vpop.f32.mrf.mxu3 }
 0x11b   : > { %v1237_v63 = vadd.f32 %v3418_v58, %v3426_v14 }
 0x11c   : > { %2648 = vst [vmem:[%s3433_s15] sm:$0xff] %v2647_v62   ;;  %v1951_v29 = vadd.f32 %v1944_v18, %v1943_v53  ;;  %v1627_v40 = vadd.f32 %v1610_v23, %v1505_v44 }
 0x11e   : > { %v1762_v3 = vadd.f32 %v1745_v22, %v1627_v40 }
 0x120   : > { %v1888_v46 = vadd.f32 %v1871_v55, %v1762_v3  ;;  %v1378_v55 = vadd.f32 %v3424_v8, %v1237_v63 }
 0x121   : > { %v1490_v33 = vpop.f32.mrf.mxu1  ;;  %v1873_v7 = vpop.f32.mrf.mxu0 }
 0x122   : > { %v1930_v12 = vadd.f32 %v1929_v36, %v1888_v46  ;;  %v1945_v13 = vmul.f32 %v1888_v46, %v1888_v46  ;;  %v1506_v43 = vadd.f32 %v1490_v33, %v1374_v39  ;;  %v1620_v49 = vpop.f32.mrf.mxu2  ;;  %v1755_v20 = vpop.f32.mrf.mxu3 }
 0x124   : > { %v1952_v21 = vadd.f32 %v1951_v29, %v1945_v13  ;;  %v1628_v56 = vadd.f32 %v1612_v28, %v1506_v43 }
 0x126   : > { %v1763_v34 = vadd.f32 %v1747_v47, %v1628_v56 }
 0x128   : > { %v1889_v41 = vadd.f32 %v1873_v7, %v1763_v34 }
 0x129   : > { %v1493_v32 = vpop.f32.mrf.mxu1  ;;  %v1876_v48 = vpop.f32.mrf.mxu0 }
 0x12a   : > { %v2652_v19 = vpack.c.bf16 %v1889_v41, %v1888_v46  ;;  %v1931_v60 = vadd.f32 %v1930_v12, %v1889_v41  ;;  %v1946_v5 = vmul.f32 %v1889_v41, %v1889_v41  ;;  %v1507_v27 = vadd.f32 %v1493_v32, %v3412_v57  ;;  %v1622_v15 = vpop.f32.mrf.mxu2  ;;  %v1757_v40 = vpop.f32.mrf.mxu3 }
 0x12b   : > { %v1236_v57 = vadd.f32 %v3410_v50, %v3422_v31 }
 0x12c   : > { %2664 = vst [vmem:[%s3433_s15 + $0x8] sm:$0xff] %v2652_v19   ;;  %v1953_v23 = vadd.f32 %v1952_v21, %v1946_v5  ;;  %v1629_v25 = vadd.f32 %v1615_v26, %v1507_v27 }
 0x12d   : > { %v1377_v1 = vadd.f32 %v3420_v11, %v1236_v57 }
 0x12e   : > { %v1764_v9 = vadd.f32 %v1750_v54, %v1629_v25 }
 0x130   : > { %v1890_v51 = vadd.f32 %v1876_v48, %v1764_v9 }
 0x131   : > { %v1495_v38 = vpop.f32.mrf.mxu1  ;;  %v1878_v42 = vpop.f32.mrf.mxu0 }
 0x132   : > { %v1932_v28 = vadd.f32 %v1931_v60, %v1890_v51  ;;  %v1947_v37 = vmul.f32 %v1890_v51, %v1890_v51  ;;  %v1508_v45 = vadd.f32 %v1495_v38, %v1376_v10  ;;  %v1881_v50 = vpop.f32.mrf.mxu2 }
 0x134   : > { %v1954_v59 = vadd.f32 %v1953_v23, %v1947_v37  ;;  %v1630_v17 = vadd.f32 %v1617_v30, %v1508_v45 }
 0x136   : > { %v1765_v4 = vadd.f32 %v1752_v24, %v1630_v17 }
 0x138   : > { %v1891_v35 = vadd.f32 %v1878_v42, %v1765_v4 }
 0x139   : > { %v1498_v22 = vpop.f32.mrf.mxu1 }
 0x13a   : > { %v2657_v16 = vpack.c.bf16 %v1891_v35, %v1890_v51  ;;  %v1933_v61 = vadd.f32 %v1932_v28, %v1891_v35  ;;  %v1948_v6 = vmul.f32 %v1891_v35, %v1891_v35  ;;  %v1509_v26 = vadd.f32 %v1498_v22, %v1377_v1  ;;  %v1883_v3 = vpop.f32.mrf.mxu2 }
 0x13c   : > { %2665 = vst [vmem:[%s3433_s15 + $0x10] sm:$0xff] %v2657_v16   ;;  %v1955_v53 = vadd.f32 %v1954_v59, %v1948_v6  ;;  %v1631_v52 = vadd.f32 %v1620_v49, %v1509_v26 }
 0x13e   : > { %v1766_v31 = vadd.f32 %v1755_v20, %v1631_v52 }
 0x140   : > { %v1892_v62 = vadd.f32 %v1881_v50, %v1766_v31 }
 0x141   : > { %v1500_v11 = vpop.f32.mrf.mxu1 }
 0x142   : > { %v1934_v36 = vadd.f32 %v1933_v61, %v1892_v62  ;;  %v1949_v18 = vmul.f32 %v1892_v62, %v1892_v62  ;;  %v1510_v44 = vadd.f32 %v1500_v11, %v1378_v55 }
 0x144   : > { %v1956_v0 = vadd.f32 %v1955_v53, %v1949_v18  ;;  %v1632_v29 = vadd.f32 %v1622_v15, %v1510_v44 }
 0x146   : > { %v1767_v47 = vadd.f32 %v1757_v40, %v1632_v29 }
 0x148   : > { %v1893_v58 = vadd.f32 %v1883_v3, %v1767_v47 }
 0x14a   : > { %v2662_v14 = vpack.c.bf16 %v1893_v58, %v1892_v62  ;;  %v1935_v30 = vadd.f32 %v1934_v36, %v1893_v58  ;;  %v1950_v39 = vmul.f32 %v1893_v58, %v1893_v58 }
 0x14c   : > { %2666 = vst [vmem:[%s3433_s15 + $0x18] sm:$0xff] %v2662_v14   ;;  %v1936_v46 = vrot.slane %v1935_v30, 4  ;;  %v1957_v33 = vadd.f32 %v1956_v0, %v1950_v39 }
 0x14e   : > { %v1937_v7 = vadd.f32 %v1936_v46, %v1935_v30  ;;  %v1958_v8 = vrot.slane %v1957_v33, 4 }
 0x150   : > { %v1938_v12 = vrot.slane %v1937_v7, 2  ;;  %v1959_v13 = vadd.f32 %v1958_v8, %v1957_v33 }
 0x152   : > { %v1939_v43 = vadd.f32 %v1938_v12, %v1937_v7  ;;  %v1960_v21 = vrot.slane %v1959_v13, 2 }
 0x154   : > { %v1940_v56 = vrot.slane %v1939_v43, 1  ;;  %v1961_v34 = vadd.f32 %v1960_v21, %v1959_v13 }
 0x156   : > { %v1941_v54 = vadd.f32 %v1940_v56, %v1939_v43  ;;  %v1962_v41 = vrot.slane %v1961_v34, 1 }
 0x158   : > { %1942 = vst [vmem:[%s370_s20] sm:$0x1] %v1941_v54  ;;  %v1963_v49 = vadd.f32 %v1962_v41, %v1961_v34 }
 0x15a   : > { %1964 = vst [vmem:[%s370_s20 + $0x1] sm:$0x1] %v1963_v49 }
 0x15b PF: > { %s17_s23 = sadd.s32 1, %s2732_s23   ;;  %s3475_s21 = smov %s2728_s22 }
 0x15c   : > { %p14_p6 = scmp.ge.s32.totalorder %s17_s23, 4   ;;  %s3476_s22 = smov %s3478_s24 }
 0x15e   :  { %16 = sbr.rel (!%p14_p6) target bundleno = 2 (0x2), region = 107 }

// kernel: simkd_forward.7
= control target key start
LH: loop header
LB: loop body
LE: loop exit
PB: predicated region body
PF: predicated region fallthrough
CT: control target
= control target key end

     0   :  { %12 = vsyncpa [#allocation4], 0  ;;  %s594_s21 = smov 0   ;;  %s681_s0 = inlined_call_operand.vmem [shape: bf16[128,128], index: 0, kind: input, shape index: {}]   ;;  %s682_s1 = inlined_call_operand.vmem [shape: f32[1,128], index: 1, kind: input, shape index: {}]   ;;  %s683_s2 = inlined_call_operand.vmem [shape: f32[1,128], index: 2, kind: input, shape index: {}]   ;;  %s684_s3 = inlined_call_operand.vmem [shape: f32[128,128], index: 3, kind: input, shape index: {}]   ;;  %s685_s4 = inlined_call_operand.vmem [shape: f32[1,128], index: 4, kind: input, shape index: {}]   ;;  %s686_s5 = inlined_call_operand.vmem [shape: f32[128,128], index: 5, kind: output, shape index: {0}]   ;;  %s687_s6 = inlined_call_operand.hbm [shape: f32[2,128], index: 6, kind: output, shape index: {1}]  }
   0x1 LB: > { %s600_s22 = sadd.s32 4294967295, %s556_s21   ;;  %p467_p0 = scmp.ge.s32.totalorder %s556_s21, 1  ;;  %s556_s21 = sphi %s594_s21, %s18_s21  }
   0x2   : > { %p212_p1 = scmp.lt.s32.totalorder %s556_s21, 3 }
   0x4   : > { %p213_p2 = pnand %p467_p0, %p212_p1 }
   0x5   : > { %s468_s23 = sshll.u32 (!%p213_p2), %s600_s22, 3  ;;  %s478_s12 = scalar_lea.vmem (!%p213_p2), [#allocation2], %s556_s21 }
   0x6   : > { %216 = sbr.rel (%p213_p2) target bundleno = 218 (0xda), region = 40  ;;  %p243_p3 = scmp.lt.s32.totalorder (!%p213_p2), %s468_s23, 15 }
   0x7   : > { %p473_p4 = scmp.ne.s32.totalorder (!%p213_p2), %s600_s22, 1 }
   0xb   : > { %s689_s23 = smov (!%p243_p3, %s468_s23), 15  ;;  %v515_v0 = vld [vmem:[%s682_s1] ss:$0 sm:$0xff] }
   0xc   : > { %s469_s24 = sshll.u32 %s689_s23, 2  ;;  %v516_v5 = vld [vmem:[%s683_s2] ss:$0 sm:$0xff]  ;;  %s471_s8 = sshll.u32 %s689_s23, 3 }
   0xd   : > { %s246_s27 = scalar_lea.vmem %s681_s0, %s469_s24  ;;  %s252_s11 = scalar_lea.vmem %s686_s5, %s471_s8 }
   0xe   : > { %v482_v1 = vld [vmem:[%s246_s27] sm:$0xff]   ;;  %v497_v2 = vld [vmem:[%s246_s27 + $0x8] sm:$0xff]   ;;  %v498_v3 = vld [vmem:[%s246_s27 + $0x10] sm:$0xff]  }
   0xf   : > { %v483_v4 = vunpack.c.l.bf16 %v482_v1  ;;  %v484_v6 = vunpack.c.h.bf16 %v482_v1  ;;  %v487_v7 = vunpack.c.l.bf16 %v497_v2  ;;  %v488_v8 = vunpack.c.h.bf16 %v497_v2  ;;  %v499_v9 = vld [vmem:[%s246_s27 + $0x18] sm:$0xff]  }
  0x10   : > { %v491_v10 = vunpack.c.l.bf16 %v498_v3  ;;  %v492_v11 = vunpack.c.h.bf16 %v498_v3  ;;  %v495_v12 = vunpack.c.l.bf16 %v499_v9  ;;  %v496_v13 = vunpack.c.h.bf16 %v499_v9 }
  0x11   : > { %v274_v14 = vmul.f32 %v515_v0, %v483_v4  ;;  %v275_v15 = vmul.f32 %v515_v0, %v484_v6  ;;  %v276_v16 = vmul.f32 %v515_v0, %v487_v7  ;;  %v277_v17 = vmul.f32 %v515_v0, %v488_v8 }
  0x12   : > { %v278_v18 = vmul.f32 %v515_v0, %v491_v10  ;;  %v279_v19 = vmul.f32 %v515_v0, %v492_v11  ;;  %v280_v20 = vmul.f32 %v515_v0, %v495_v12  ;;  %v281_v25 = vmul.f32 %v515_v0, %v496_v13 }
  0x13   : > { %v286_v21 = vadd.f32 %v516_v5, %v274_v14  ;;  %v287_v22 = vadd.f32 %v516_v5, %v275_v15  ;;  %v288_v23 = vadd.f32 %v516_v5, %v276_v16  ;;  %v289_v24 = vadd.f32 %v516_v5, %v277_v17 }
  0x14   : > { %v290_v29 = vadd.f32 %v516_v5, %v278_v18  ;;  %v291_v30 = vadd.f32 %v516_v5, %v279_v19  ;;  %v292_v33 = vadd.f32 %v516_v5, %v280_v20  ;;  %v293_v34 = vadd.f32 %v516_v5, %v281_v25 }
  0x15   : > { %v294_v26 = vmax.f32 %v286_v21, 0.0  ;;  %v295_v27 = vmax.f32 %v287_v22, 0.0  ;;  %v296_v28 = vmax.f32 %v288_v23, 0.0  ;;  %v297_v32 = vmax.f32 %v289_v24, 0.0 }
  0x16   : > { %v298_v36 = vmax.f32 %v290_v29, 0.0  ;;  %v299_v37 = vmax.f32 %v291_v30, 0.0  ;;  %v300_v39 = vmax.f32 %v292_v33, 0.0  ;;  %v301_v40 = vmax.f32 %v293_v34, 0.0 }
  0x17   : > { %302 = vst [vmem:[%s252_s11] sm:$0xff] %v294_v26  ;;  %v310_v31 = vadd.f32 %v295_v27, %v294_v26 }
  0x18   : > { %303 = vst [vmem:[%s252_s11 + $0x8] sm:$0xff] %v295_v27 }
  0x19   : > { %304 = vst [vmem:[%s252_s11 + $0x10] sm:$0xff] %v296_v28  ;;  %v311_v35 = vadd.f32 %v310_v31, %v296_v28 }
  0x1a   : > { %305 = vst [vmem:[%s252_s11 + $0x18] sm:$0xff] %v297_v32 }
  0x1b   : > { %v312_v38 = vadd.f32 %v311_v35, %v297_v32  ;;  %306 = vst [vmem:[%s252_s11 + $0x20] sm:$0xff] %v298_v36 }
  0x1c   : > { %307 = vst [vmem:[%s252_s11 + $0x28] sm:$0xff] %v299_v37 }
  0x1d   : > { %v313_v41 = vadd.f32 %v312_v38, %v298_v36  ;;  %308 = vst [vmem:[%s252_s11 + $0x30] sm:$0xff] %v300_v39 }
  0x1e   : > { %309 = vst [vmem:[%s252_s11 + $0x38] sm:$0xff] %v301_v40 }
  0x1f   : > { %v314_v42 = vadd.f32 %v313_v41, %v299_v37 }
  0x21   : > { %v315_v43 = vadd.f32 %v314_v42, %v300_v39 }
  0x23   : > { %v316_v44 = vadd.f32 %v315_v43, %v301_v40 }
  0x25   : > { %v317_v45 = vrot.slane %v316_v44, 4 }
  0x27   : > { %v318_v46 = vadd.f32 %v317_v45, %v316_v44 }
  0x29   : > { %v319_v47 = vrot.slane %v318_v46, 2 }
  0x2b   : > { %v320_v48 = vadd.f32 %v319_v47, %v318_v46 }
  0x2d   : > { %v321_v49 = vrot.slane %v320_v48, 1 }
  0x2f   : > { %v322_v50 = vadd.f32 %v321_v49, %v320_v48  ;;  %329 = sbr.rel (%p473_p4) target bundleno = 213 (0xd5), region = 44 }
  0x31   : > { %v323_v51 = vmul.f32 0.015625, %v322_v50 }
  0x33   : > { %480 = vst [vmem:[%s478_s12 - $0x1] sm:$0x1] %v323_v51 }
  0x34   : > { %v347_v52 = vld [vmem:[%s684_s3 + $0x78] sm:$0xff]  ;;  %v346_v53 = vld [vmem:[%s684_s3 + $0x70] sm:$0xff]  ;;  %v345_v54 = vld [vmem:[%s684_s3 + $0x68] sm:$0xff] }
  0x35   : > { %359 = vmatpush.msra.mxu0 %v347_v52  ;;  %v344_v55 = vld [vmem:[%s684_s3 + $0x60] sm:$0xff]  ;;  %v343_v58 = vld [vmem:[%s684_s3 + $0x58] sm:$0xff]  ;;  %v342_v59 = vld [vmem:[%s684_s3 + $0x50] sm:$0xff] }
  0x36   : > { %v341_v60 = vld [vmem:[%s684_s3 + $0x48] sm:$0xff]  ;;  %v340_v61 = vld [vmem:[%s684_s3 + $0x40] sm:$0xff]  ;;  %v339_v62 = vld [vmem:[%s684_s3 + $0x38] sm:$0xff] }
  0x37   : > { %360 = vmatpush.msra.mxu0 %v346_v53  ;;  %v338_v63 = vld [vmem:[%s684_s3 + $0x30] sm:$0xff]  ;;  %v337_v0 = vld [vmem:[%s684_s3 + $0x28] sm:$0xff]  ;;  %v336_v1 = vld [vmem:[%s684_s3 + $0x20] sm:$0xff] }
  0x38   : > { %v335_v2 = vld [vmem:[%s684_s3 + $0x18] sm:$0xff]  ;;  %v334_v3 = vld [vmem:[%s684_s3 + $0x10] sm:$0xff]  ;;  %v333_v4 = vld [vmem:[%s684_s3 + $0x8] sm:$0xff] }
  0x39   : > { %361 = vmatpush.msra.mxu0 %v345_v54  ;;  %v332_v5 = vld [vmem:[%s684_s3] sm:$0xff] }
  0x3a   : > { %v330_v56 = vld [vmem:[#allocation2] sm:$0x1]  ;;  %v331_v57 = vld [vmem:[#allocation2 + $0x1] sm:$0x1]  ;;  %v517_v7 = vld [vmem:[%s685_s4] ss:$0 sm:$0xff] }
  0x3b   : > { %354 = vst [vmem:[#allocation1] ss:$9 sm:$0xff] %v330_v56  ;;  %362 = vmatpush.msra.mxu0 %v344_v55 }
  0x3c   : > { %356 = vst [vmem:[#allocation1 + $0x1] ss:$9 sm:$0xff] %v331_v57 }
  0x3d   : > { %363 = vmatpush.msra.mxu0 %v343_v58 }
  0x3f   : > { %364 = vmatpush.msra.mxu0 %v342_v59 }
  0x41   : > { %365 = vmatpush.msra.mxu0 %v341_v60 }
  0x43   : > { %366 = vmatpush.msra.mxu0 %v340_v61  ;;  %v357_v6 = vld [vmem:[#allocation1] sm:$0xff] }
  0x45   : > { %367 = vmatpush.msra.mxu0 %v339_v62 }
  0x47   : > { %368 = vmatpush.msra.mxu0 %v338_v63 }
  0x49   : > { %369 = vmatpush.msra.mxu0 %v337_v0 }
  0x4b   : > { %370 = vmatpush.msra.mxu0 %v336_v1 }
  0x4d   : > { %371 = vmatpush.msra.mxu0 %v335_v2 }
  0x4f   : > { %372 = vmatpush.msra.mxu0 %v334_v3 }
  0x51   : > { %373 = vmatpush.msra.mxu0 %v333_v4 }
  0x53   : > { %374 = vmatpush.msra.mxu0 %v332_v5 }
  0x54   : > { %375 = vmatmul.f32.vlgmr.msra.gmra.mxu0 %v357_v6 }
  0xd1   : > { %v376_v8 = vpop.f32.mrf.mxu0 }
  0xd2   : > { %v377_v9 = vadd.f32 %v517_v7, %v376_v8 }
  0xd4   : > { %379 = vst [vmem:[#allocation3] sm:$0x3] %v377_v9 }
  0xd5 PF: > { %p504_p5 = scmp.eq.s32.totalorder %s600_s22, 1  ;;  %s558_s27 = smov [#allocation3]  }
  0xd6   : > { %s395_s28 = sshll.u32 %s558_s27, 4  ;;  %s397_s7 = sshll.u32 %s687_s6, 4  ;;  %s396_s28 = int_to_ptr.vmem [resolvable:$true] %s395_s28  ;;  %s398_s7 = int_to_ptr.hbm [resolvable:$true] %s397_s7 }
  0xd7   : > { %501 = dma.vmem_to_hbm [thread:$0]  (%p504_p5), %s396_s28, 32, %s398_s7, [#allocation4]  }
  0xd8   : > { %551 = dma.done.wait (%p504_p5), [#allocation4], 32  }
  0xd9   : > { %553 = vsyncadd (%p504_p5), [#allocation4], 4294967264 }
  0xda PF: > { %s18_s21 = sadd.s32 1, %s556_s21  }
  0xdb   : > { %p15_p6 = scmp.ge.s32.totalorder %s18_s21, 4  }
  0xdd   :  { %17 = sbr.rel (!%p15_p6) target bundleno = 1 (0x1), region = 85 }
  0xe2   :  { %419 = vsyncpa [#allocation4], 1 }
  0xe3   :  { %421 = vsyncpa [#allocation4 + $0x1], 1 }

</bundles_post_ra>
